<compile_context>
chip_gen: v5e
topology: v5e:2x2
jax: 0.10.0
libtpu: 0.0.40
codegen_flags: <defaults>
</compile_context>

<pallas_src>
import functools

import jax
import jax.numpy as jnp
import numpy as np
from jax import lax
from jax.experimental import pallas as pl
from jax.experimental.pallas import tpu as pltpu

EPS = 1e-5


# ----------------------------- small helpers -----------------------------
def _layernorm(x, gamma, beta):
    # x: (R, D) f32, gamma/beta: (1, D) f32
    mean = jnp.mean(x, axis=-1, keepdims=True)
    var = jnp.mean((x - mean) ** 2, axis=-1, keepdims=True)
    inv = lax.rsqrt(var + EPS)
    return (x - mean) * inv * gamma + beta


def _gelu(x, approximate):
    if approximate:
        # tanh approximation -> EUP tanh instead of a long erf polynomial (v6e/v7x win).
        return jax.nn.gelu(x, approximate=True)
    # PyTorch nn.GELU() default = exact erf formulation (f32).
    return 0.5 * x * (1.0 + lax.erf(x * (2.0 ** -0.5)))


def _vmem_capacity_bytes():
    """Physical VMEM of the current TPU generation (conservative fallback = 64 MiB)."""
    try:
        info = pltpu.get_tpu_info()
        for attr in ("vmem_capacity_bytes", "vmem_bytes", "vmem_size_bytes"):
            cap = getattr(info, attr, None)
            if cap:
                return int(cap)
    except Exception:
        pass
    return 64 * 1024 * 1024


def _select_seqs_per_block(B, N, rows_per_block):
    """Pick how many whole sequences go in one grid step.

    Constraints: bb divides B; block rows (bb*N) are 8-aligned (sublane rule) unless the
    block spans the full array; prefer blocks that fit rows_per_block AND leave >= 2 grid
    steps so the parallel axis can shard across v7x's two TensorCores.
    """
    total_rows = B * N
    divisors = [c for c in range(1, B + 1) if B % c == 0]
    legal = [c for c in divisors if (c * N) % 8 == 0 or c * N == total_rows]
    if not legal:
        legal = [B]                       # single full-array block is always layout-legal
    pref = [c for c in legal if c * N <= rows_per_block and B // c >= 2]
    if pref:
        return max(pref)
    fits = [c for c in legal if c * N <= rows_per_block]
    if fits:
        return max(fits)
    return min(legal)


def _select_ffn_chunk(Dh, max_chunk=1024):
    """Dh tile width for the FFN (lane-dense: multiple of 128, or the whole Dh)."""
    if Dh <= max_chunk:
        return Dh
    for cand in range(max_chunk, 127, -128):
        if Dh % cand == 0:
            return cand
    return Dh


# ------------------------------- the kernel -------------------------------
def encoder_kernel(n_head, seqs_per_blk, seq_len, ffn_chunk, matmul_dtype,
                   approx_softmax, gelu_approximate,
                   x_ref, bias_ref, bqkv_ref, b1_ref, wqkv_ref, wo_ref,
                   w1_ref, w2_ref, out_ref, attn_scr):
    R, D = x_ref.shape                       # R = seqs_per_blk * seq_len
    Dh = w1_ref.shape[1]
    d_k = D // n_head
    mm = matmul_dtype

    x = x_ref[...].astype(jnp.float32)       # (R, D)

    b = bias_ref[...]                        # (6, D) f32, packed vectors
    g1, be1, bo = b[0:1], b[1:2], b[2:3]
    g2, be2, b2 = b[3:4], b[4:5], b[5:6]

    # ---- LayerNorm 1 (f32) ----
    xn = _layernorm(x, g1, be1)

    # ---- fused QKV projection: one (R, D) x (D, 3D) MXU matmul, bias added once ----
    qkv = jnp.dot(xn.astype(mm), wqkv_ref[...],
                  preferred_element_type=jnp.float32) + bqkv_ref[...]     # (R, 3D) f32

    # ---- per-head attention; head outputs written straight into VMEM scratch ----
    scale = float(d_k) ** -0.5
    for h in range(n_head):
        qo, ko, vo = h * d_k, D + h * d_k, 2 * D + h * d_k
        qh = qkv[:, qo:qo + d_k].reshape(seqs_per_blk, seq_len, d_k).astype(mm)
        kh = qkv[:, ko:ko + d_k].reshape(seqs_per_blk, seq_len, d_k).astype(mm)
        vh = qkv[:, vo:vo + d_k].reshape(seqs_per_blk, seq_len, d_k).astype(mm)
        s = jnp.einsum('bqd,bkd->bqk', qh, kh,
                       preferred_element_type=jnp.float32) * scale        # (bb, N, N)
        m = jnp.max(s, axis=-1, keepdims=True)
        e = jnp.exp(s - m)
        denom = jnp.sum(e, axis=-1, keepdims=True)
        p = e * pl.reciprocal(denom, approx=approx_softmax)
        oh = jnp.einsum('bqk,bkd->bqd', p.astype(mm), vh,
                        preferred_element_type=jnp.float32)               # (bb, N, d_k)
        attn_scr[:, h * d_k:(h + 1) * d_k] = oh.reshape(R, d_k)

    # ---- output projection + residual 1 ----
    attn = jnp.dot(attn_scr[...].astype(mm), wo_ref[...],
                   preferred_element_type=jnp.float32) + bo
    out1 = x + attn

    # ---- LayerNorm 2 + FFN tiled over Dh (bounded working set) + residual 2 ----
    xn2 = _layernorm(out1, g2, be2)
    xn2_mm = xn2.astype(mm)
    y = jnp.zeros((R, D), jnp.float32)
    for lo in range(0, Dh, ffn_chunk):
        hi = lo + ffn_chunk
        hmid = jnp.dot(xn2_mm, w1_ref[:, lo:hi],
                       preferred_element_type=jnp.float32) + b1_ref[:, lo:hi]
        hmid = _gelu(hmid, gelu_approximate)
        y = y + jnp.dot(hmid.astype(mm), w2_ref[lo:hi, :],
                        preferred_element_type=jnp.float32)

    out_ref[...] = (out1 + y + b2).astype(out_ref.dtype)


# ------------------------------- the wrapper -------------------------------
def prepare_params(params, matmul_dtype=jnp.bfloat16):
    """One-time parameter packing (hoisted out of the per-call path)."""
    return {
        'wqkv': jnp.concatenate([params['wq'], params['wk'], params['wv']],
                                axis=1).astype(matmul_dtype),             # (D, 3D)
        'wo': params['wo'].astype(matmul_dtype),                          # (D, D)
        'w1': params['w1'].astype(matmul_dtype),                          # (D, Dh)
        'w2': params['w2'].astype(matmul_dtype),                          # (Dh, D)
        'bqkv': jnp.concatenate([params['bq'], params['bk'], params['bv']],
                                axis=1).astype(jnp.float32),              # (1, 3D)
        'bias_pack': jnp.concatenate(
            [params['g1'], params['be1'], params['bo'],
             params['g2'], params['be2'], params['b2']],
            axis=0).astype(jnp.float32),                                  # (6, D)
        'b1': params['b1'].astype(jnp.float32),                           # (1, Dh)
    }


def transformer_encoder(data, packed, n_head, *,
                        approx_softmax=True,
                        gelu_approximate=False,
                        rows_per_block=None,
                        single_buffer_weights=True):
    B, N, D = data.shape
    Dh = packed['w1'].shape[1]
    matmul_dtype = packed['wqkv'].dtype
    assert D % n_head == 0

    # Generation-aware VMEM planning (v5e/v6e: 128 MiB, v7x: 64 MiB physical).
    vmem_cap = _vmem_capacity_bytes()
    if rows_per_block is None:
        rows_per_block = 1024 if vmem_cap >= (100 << 20) else 256
    vmem_limit = int(min(vmem_cap * 0.8, 112 * 1024 * 1024))

    bb = _select_seqs_per_block(B, N, rows_per_block)
    R = bb * N
    ffn_chunk = _select_ffn_chunk(Dh)

    x2 = data.reshape(B * N, D)

    kernel = functools.partial(encoder_kernel, n_head, bb, N, ffn_chunk,
                               matmul_dtype, approx_softmax, gelu_approximate)

    const = lambda i: (0, 0)          # grid-invariant operands (weights / biases)

    def build(single_buf):
        if single_buf:
            wspec = lambda shape: pl.BlockSpec(shape, const,
                                               pipeline_mode=pl.Buffered(1))
        else:
            wspec = lambda shape: pl.BlockSpec(shape, const)
        return pl.pallas_call(
            kernel,
            out_shape=jax.ShapeDtypeStruct((B * N, D), data.dtype),
            grid_spec=pltpu.PrefetchScalarGridSpec(
                num_scalar_prefetch=0,
                grid=(B // bb,),
                in_specs=[
                    pl.BlockSpec((R, D), lambda i: (i, 0)),   # activations (row tile)
                    wspec((6, D)),                            # packed LN/bias vectors
                    wspec((1, 3 * D)),                        # packed q/k/v biases
                    wspec((1, Dh)),                           # FFN bias 1
                    wspec((D, 3 * D)),                        # fused Wq|Wk|Wv
                    wspec((D, D)),                            # Wo
                    wspec((D, Dh)),                           # W1
                    wspec((Dh, D)),                           # W2
                ],
                out_specs=pl.BlockSpec((R, D), lambda i: (i, 0)),
                scratch_shapes=[pltpu.VMEM((R, D), jnp.float32)],  # per-head attn output
            ),
            compiler_params=pltpu.CompilerParams(
                # Independent sequence blocks -> shard across TensorCores on v7x.
                dimension_semantics=("parallel",),
                vmem_limit_bytes=vmem_limit,
            ),
        )

    args = (x2, packed['bias_pack'], packed['bqkv'], packed['b1'],
            packed['wqkv'], packed['wo'], packed['w1'], packed['w2'])

    if single_buffer_weights:
        try:
            out = build(True)(*args)
        except Exception:
            # pipeline_mode=pl.Buffered(1) not supported by this JAX for top-level
            # pallas_call blocks -> fall back to default (double-buffered) weight specs.
            out = build(False)(*args)
    else:
        out = build(False)(*args)

    return out.reshape(B, N, D)


# ---------------- pure-JAX reference (for verification) ----------------
def reference(data, p, n_head):
    B, N, D = data.shape
    d_k = D // n_head

    def ln(x, g, b):
        mu = jnp.mean(x, -1, keepdims=True)
        var = jnp.mean((x - mu) ** 2, -1, keepdims=True)
        return (x - mu) / jnp.sqrt(var + EPS) * g + b

    res = ln(data, p['g1'], p['be1'])
    q = res @ p['wq'] + p['bq']
    k = res @ p['wk'] + p['bk']
    v = res @ p['wv'] + p['bv']
    q = q.reshape(B, N, n_head, d_k).transpose(0, 2, 1, 3)
    k = k.reshape(B, N, n_head, d_k).transpose(0, 2, 1, 3)
    v = v.reshape(B, N, n_head, d_k).transpose(0, 2, 1, 3)
    scores = jnp.einsum('bhqd,bhkd->bhqk', q, k) / jnp.sqrt(jnp.float32(d_k))
    attn = jax.nn.softmax(scores, axis=-1)
    o = jnp.einsum('bhqk,bhkd->bhqd', attn, v)
    o = o.transpose(0, 2, 1, 3).reshape(B, N, D)
    o = o @ p['wo'] + p['bo']
    out1 = data + o
    res2 = ln(out1, p['g2'], p['be2'])
    h = res2 @ p['w1'] + p['b1']
    h = 0.5 * h * (1.0 + lax.erf(h / jnp.sqrt(2.0)))
    y = h @ p['w2'] + p['b2']
    return out1 + y


def init_params(key, D, fc_ratio):
    Dh = D * fc_ratio
    ks = jax.random.split(key, 8)
    s = 0.05
    return {
        'g1': jnp.ones((1, D), jnp.float32),
        'be1': jnp.zeros((1, D), jnp.float32),
        'wq': jax.random.normal(ks[0], (D, D), jnp.float32) * s,
        'bq': jax.random.normal(ks[1], (1, D), jnp.float32) * s,
        'wk': jax.random.normal(ks[2], (D, D), jnp.float32) * s,
        'bk': jnp.zeros((1, D), jnp.float32),
        'wv': jax.random.normal(ks[3], (D, D), jnp.float32) * s,
        'bv': jnp.zeros((1, D), jnp.float32),
        'wo': jax.random.normal(ks[4], (D, D), jnp.float32) * s,
        'bo': jnp.zeros((1, D), jnp.float32),
        'g2': jnp.ones((1, D), jnp.float32),
        'be2': jnp.zeros((1, D), jnp.float32),
        'w1': jax.random.normal(ks[5], (D, Dh), jnp.float32) * s,
        'b1': jax.random.normal(ks[6], (1, Dh), jnp.float32) * s,
        'w2': jax.random.normal(ks[7], (Dh, D), jnp.float32) * s,
        'b2': jnp.zeros((1, D), jnp.float32),
    }


if __name__ == "__main__":
    B, N, D = 2, 8, 32          # batch, seq, embed_dim (small demo shapes)
    n_head = 4
    fc_ratio = 4

    key = jax.random.PRNGKey(0)
    kx, kp = jax.random.split(key)
    data = jax.random.normal(kx, (B, N, D), jnp.float32)
    params = init_params(kp, D, fc_ratio)

    ref = jax.block_until_ready(reference(data, params, n_head))

    # Exact-arithmetic path (f32 matmuls, exact reciprocal, exact-erf GELU) -> tight check.
    packed_f32 = prepare_params(params, jnp.float32)
    out_f32 = transformer_encoder(data, packed_f32, n_head, approx_softmax=False)
    out_f32 = jax.block_until_ready(out_f32)
    np.testing.assert_allclose(np.asarray(out_f32), np.asarray(ref),
                               rtol=1e-3, atol=1e-3)

    # Default fast path (bf16 MXU operands, approx softmax reciprocal).
    packed_bf16 = prepare_params(params, jnp.bfloat16)
    out_fast = transformer_encoder(data, packed_bf16, n_head)
    out_fast = jax.block_until_ready(out_fast)
    np.testing.assert_allclose(np.asarray(out_fast), np.asarray(ref),
                               rtol=5e-2, atol=5e-2)

    print("KERNEL_OK")
</pallas_src>

<mosaic_0001>
module attributes {stable_mosaic.version = 11 : i64} {
  func.func @encoder_kernel(%arg0: i32, %arg1: memref<8x32xf32, #tpu.memory_space<vmem>>, %arg2: memref<6x32xf32, #tpu.memory_space<vmem>>, %arg3: memref<1x96xf32, #tpu.memory_space<vmem>>, %arg4: memref<1x128xf32, #tpu.memory_space<vmem>>, %arg5: memref<32x96xf32, #tpu.memory_space<vmem>>, %arg6: memref<32x32xf32, #tpu.memory_space<vmem>>, %arg7: memref<32x128xf32, #tpu.memory_space<vmem>>, %arg8: memref<128x32xf32, #tpu.memory_space<vmem>>, %arg9: memref<8x32xf32, #tpu.memory_space<vmem>>, %arg10: memref<8x32xf32, #tpu.memory_space<vmem>>) attributes {dimension_semantics = [#tpu.dimension_semantics<parallel>], iteration_bounds = array<i64: 2>, scalar_prefetch = 0 : i64, scratch_operands = 1 : i64, tpu.core_type = #tpu.core_type<tc>, window_params = [{transform_indices = @transform_0, window_bounds = array<i64: 8, 32>}, {pipeline_mode = #tpu.pipeline_mode<synchronous>, transform_indices = @transform_1, window_bounds = array<i64: 6, 32>}, {pipeline_mode = #tpu.pipeline_mode<synchronous>, transform_indices = @transform_2, window_bounds = array<i64: 1, 96>}, {pipeline_mode = #tpu.pipeline_mode<synchronous>, transform_indices = @transform_3, window_bounds = array<i64: 1, 128>}, {pipeline_mode = #tpu.pipeline_mode<synchronous>, transform_indices = @transform_4, window_bounds = array<i64: 32, 96>}, {pipeline_mode = #tpu.pipeline_mode<synchronous>, transform_indices = @transform_5, window_bounds = array<i64: 32, 32>}, {pipeline_mode = #tpu.pipeline_mode<synchronous>, transform_indices = @transform_6, window_bounds = array<i64: 32, 128>}, {pipeline_mode = #tpu.pipeline_mode<synchronous>, transform_indices = @transform_7, window_bounds = array<i64: 128, 32>}, {transform_indices = @transform_8, window_bounds = array<i64: 8, 32>}]} {
    %c0 = arith.constant 0 : index
    %c0_0 = arith.constant 0 : index
    %0 = vector.load %arg1[%c0, %c0_0] : memref<8x32xf32, #tpu.memory_space<vmem>>, vector<8x32xf32>
    %c0_1 = arith.constant 0 : index
    %c0_2 = arith.constant 0 : index
    %1 = vector.load %arg2[%c0_1, %c0_2] : memref<6x32xf32, #tpu.memory_space<vmem>>, vector<6x32xf32>
    %2 = vector.extract_strided_slice %1 {offsets = [0, 0], sizes = [1, 32], strides = [1, 1]} : vector<6x32xf32> to vector<1x32xf32>
    %3 = vector.extract_strided_slice %1 {offsets = [1, 0], sizes = [1, 32], strides = [1, 1]} : vector<6x32xf32> to vector<1x32xf32>
    %4 = vector.extract_strided_slice %1 {offsets = [2, 0], sizes = [1, 32], strides = [1, 1]} : vector<6x32xf32> to vector<1x32xf32>
    %5 = vector.extract_strided_slice %1 {offsets = [3, 0], sizes = [1, 32], strides = [1, 1]} : vector<6x32xf32> to vector<1x32xf32>
    %6 = vector.extract_strided_slice %1 {offsets = [4, 0], sizes = [1, 32], strides = [1, 1]} : vector<6x32xf32> to vector<1x32xf32>
    %7 = vector.extract_strided_slice %1 {offsets = [5, 0], sizes = [1, 32], strides = [1, 1]} : vector<6x32xf32> to vector<1x32xf32>
    %cst = arith.constant dense<0.000000e+00> : vector<8xf32>
    %8 = vector.multi_reduction <add>, %0, %cst [1] : vector<8x32xf32> to vector<8xf32>
    %9 = vector.shape_cast %8 : vector<8xf32> to vector<8x1xf32>
    %cst_3 = arith.constant 3.200000e+01 : f32
    %10 = vector.broadcast %cst_3 : f32 to vector<8x1xf32>
    %11 = arith.divf %9, %10 : vector<8x1xf32>
    %12 = vector.broadcast %11 : vector<8x1xf32> to vector<8x32xf32>
    %13 = arith.subf %0, %12 : vector<8x32xf32>
    %14 = arith.mulf %13, %13 : vector<8x32xf32>
    %cst_4 = arith.constant dense<0.000000e+00> : vector<8xf32>
    %15 = vector.multi_reduction <add>, %14, %cst_4 [1] : vector<8x32xf32> to vector<8xf32>
    %16 = vector.shape_cast %15 : vector<8xf32> to vector<8x1xf32>
    %cst_5 = arith.constant 3.200000e+01 : f32
    %17 = vector.broadcast %cst_5 : f32 to vector<8x1xf32>
    %18 = arith.divf %16, %17 : vector<8x1xf32>
    %cst_6 = arith.constant 9.99999974E-6 : f32
    %19 = vector.broadcast %cst_6 : f32 to vector<8x1xf32>
    %20 = arith.addf %18, %19 : vector<8x1xf32>
    %21 = math.rsqrt %20 : vector<8x1xf32>
    %22 = vector.broadcast %11 : vector<8x1xf32> to vector<8x32xf32>
    %23 = arith.subf %0, %22 : vector<8x32xf32>
    %24 = vector.broadcast %21 : vector<8x1xf32> to vector<8x32xf32>
    %25 = arith.mulf %23, %24 : vector<8x32xf32>
    %26 = vector.broadcast %2 : vector<1x32xf32> to vector<8x32xf32>
    %27 = arith.mulf %25, %26 : vector<8x32xf32>
    %28 = vector.broadcast %3 : vector<1x32xf32> to vector<8x32xf32>
    %29 = arith.addf %27, %28 : vector<8x32xf32>
    %c0_7 = arith.constant 0 : index
    %c0_8 = arith.constant 0 : index
    %30 = vector.load %arg5[%c0_7, %c0_8] : memref<32x96xf32, #tpu.memory_space<vmem>>, vector<32x96xf32>
    %cst_9 = arith.constant dense<0.000000e+00> : vector<8x96xf32>
    %31 = tpu.matmul %29, %30, %cst_9 {dimension_numbers = #tpu.dot_dimension_numbers<[1], [0], [0], [1], [0, 0, 1, 1], [], []>} : vector<8x32xf32>, vector<32x96xf32>, vector<8x96xf32> -> vector<8x96xf32>
    %c0_10 = arith.constant 0 : index
    %c0_11 = arith.constant 0 : index
    %32 = vector.load %arg3[%c0_10, %c0_11] : memref<1x96xf32, #tpu.memory_space<vmem>>, vector<1x96xf32>
    %33 = vector.broadcast %32 : vector<1x96xf32> to vector<8x96xf32>
    %34 = arith.addf %31, %33 : vector<8x96xf32>
    %35 = vector.extract_strided_slice %34 {offsets = [0, 0], sizes = [8, 8], strides = [1, 1]} : vector<8x96xf32> to vector<8x8xf32>
    %36 = vector.shape_cast %35 : vector<8x8xf32> to vector<1x8x8xf32>
    %37 = vector.extract_strided_slice %34 {offsets = [0, 32], sizes = [8, 8], strides = [1, 1]} : vector<8x96xf32> to vector<8x8xf32>
    %38 = vector.shape_cast %37 : vector<8x8xf32> to vector<1x8x8xf32>
    %39 = vector.extract_strided_slice %34 {offsets = [0, 64], sizes = [8, 8], strides = [1, 1]} : vector<8x96xf32> to vector<8x8xf32>
    %40 = vector.shape_cast %39 : vector<8x8xf32> to vector<1x8x8xf32>
    "tpu.trace_start"() <{level = 10 : i32, message = "bqd,bkd->bqk"}> : () -> ()
    %cst_12 = arith.constant dense<0.000000e+00> : vector<1x8x8xf32>
    %41 = tpu.matmul %36, %38, %cst_12 {dimension_numbers = #tpu.dot_dimension_numbers<[2], [2], [1], [1], [0, 0, 0, 1, 1, 1], [0], [0]>} : vector<1x8x8xf32>, vector<1x8x8xf32>, vector<1x8x8xf32> -> vector<1x8x8xf32>
    "tpu.trace_stop"() : () -> ()
    %cst_13 = arith.constant 0.353553385 : f32
    %42 = vector.broadcast %cst_13 : f32 to vector<1x8x8xf32>
    %43 = arith.mulf %41, %42 : vector<1x8x8xf32>
    %cst_14 = arith.constant dense<0xFF800000> : vector<1x8xf32>
    %44 = vector.multi_reduction <maximumf>, %43, %cst_14 [2] : vector<1x8x8xf32> to vector<1x8xf32>
    %45 = vector.shape_cast %44 : vector<1x8xf32> to vector<1x8x1xf32>
    %46 = vector.broadcast %45 : vector<1x8x1xf32> to vector<1x8x8xf32>
    %47 = arith.subf %43, %46 : vector<1x8x8xf32>
    %48 = math.exp %47 : vector<1x8x8xf32>
    %cst_15 = arith.constant dense<0.000000e+00> : vector<1x8xf32>
    %49 = vector.multi_reduction <add>, %48, %cst_15 [2] : vector<1x8x8xf32> to vector<1x8xf32>
    %50 = vector.shape_cast %49 : vector<1x8xf32> to vector<1x8x1xf32>
    %51 = tpu.reciprocal %50 : vector<1x8x1xf32> -> vector<1x8x1xf32>
    %52 = vector.broadcast %51 : vector<1x8x1xf32> to vector<1x8x8xf32>
    %53 = arith.mulf %48, %52 : vector<1x8x8xf32>
    "tpu.trace_start"() <{level = 10 : i32, message = "bqk,bkd->bqd"}> : () -> ()
    %cst_16 = arith.constant dense<0.000000e+00> : vector<1x8x8xf32>
    %54 = tpu.matmul %53, %40, %cst_16 {dimension_numbers = #tpu.dot_dimension_numbers<[2], [1], [1], [2], [0, 0, 0, 1, 1, 2], [0], [0]>} : vector<1x8x8xf32>, vector<1x8x8xf32>, vector<1x8x8xf32> -> vector<1x8x8xf32>
    "tpu.trace_stop"() : () -> ()
    %55 = vector.shape_cast %54 : vector<1x8x8xf32> to vector<8x8xf32>
    %c0_17 = arith.constant 0 : index
    %c0_18 = arith.constant 0 : index
    %56 = vector.load %arg10[%c0_17, %c0_18] : memref<8x32xf32, #tpu.memory_space<vmem>>, vector<8x8xf32>
    tpu.vector_store %arg10[%c0_17, %c0_18], %55 {strides = array<i32>} : memref<8x32xf32, #tpu.memory_space<vmem>>, vector<8x8xf32>,
    %57 = vector.extract_strided_slice %34 {offsets = [0, 8], sizes = [8, 8], strides = [1, 1]} : vector<8x96xf32> to vector<8x8xf32>
    %58 = vector.shape_cast %57 : vector<8x8xf32> to vector<1x8x8xf32>
    %59 = vector.extract_strided_slice %34 {offsets = [0, 40], sizes = [8, 8], strides = [1, 1]} : vector<8x96xf32> to vector<8x8xf32>
    %60 = vector.shape_cast %59 : vector<8x8xf32> to vector<1x8x8xf32>
    %61 = vector.extract_strided_slice %34 {offsets = [0, 72], sizes = [8, 8], strides = [1, 1]} : vector<8x96xf32> to vector<8x8xf32>
    %62 = vector.shape_cast %61 : vector<8x8xf32> to vector<1x8x8xf32>
    "tpu.trace_start"() <{level = 10 : i32, message = "bqd,bkd->bqk"}> : () -> ()
    %cst_19 = arith.constant dense<0.000000e+00> : vector<1x8x8xf32>
    %63 = tpu.matmul %58, %60, %cst_19 {dimension_numbers = #tpu.dot_dimension_numbers<[2], [2], [1], [1], [0, 0, 0, 1, 1, 1], [0], [0]>} : vector<1x8x8xf32>, vector<1x8x8xf32>, vector<1x8x8xf32> -> vector<1x8x8xf32>
    "tpu.trace_stop"() : () -> ()
    %cst_20 = arith.constant 0.353553385 : f32
    %64 = vector.broadcast %cst_20 : f32 to vector<1x8x8xf32>
    %65 = arith.mulf %63, %64 : vector<1x8x8xf32>
    %cst_21 = arith.constant dense<0xFF800000> : vector<1x8xf32>
    %66 = vector.multi_reduction <maximumf>, %65, %cst_21 [2] : vector<1x8x8xf32> to vector<1x8xf32>
    %67 = vector.shape_cast %66 : vector<1x8xf32> to vector<1x8x1xf32>
    %68 = vector.broadcast %67 : vector<1x8x1xf32> to vector<1x8x8xf32>
    %69 = arith.subf %65, %68 : vector<1x8x8xf32>
    %70 = math.exp %69 : vector<1x8x8xf32>
    %cst_22 = arith.constant dense<0.000000e+00> : vector<1x8xf32>
    %71 = vector.multi_reduction <add>, %70, %cst_22 [2] : vector<1x8x8xf32> to vector<1x8xf32>
    %72 = vector.shape_cast %71 : vector<1x8xf32> to vector<1x8x1xf32>
    %73 = tpu.reciprocal %72 : vector<1x8x1xf32> -> vector<1x8x1xf32>
    %74 = vector.broadcast %73 : vector<1x8x1xf32> to vector<1x8x8xf32>
    %75 = arith.mulf %70, %74 : vector<1x8x8xf32>
    "tpu.trace_start"() <{level = 10 : i32, message = "bqk,bkd->bqd"}> : () -> ()
    %cst_23 = arith.constant dense<0.000000e+00> : vector<1x8x8xf32>
    %76 = tpu.matmul %75, %62, %cst_23 {dimension_numbers = #tpu.dot_dimension_numbers<[2], [1], [1], [2], [0, 0, 0, 1, 1, 2], [0], [0]>} : vector<1x8x8xf32>, vector<1x8x8xf32>, vector<1x8x8xf32> -> vector<1x8x8xf32>
    "tpu.trace_stop"() : () -> ()
    %77 = vector.shape_cast %76 : vector<1x8x8xf32> to vector<8x8xf32>
    %c0_24 = arith.constant 0 : index
    %c8 = arith.constant 8 : index
    %78 = vector.load %arg10[%c0_24, %c8] : memref<8x32xf32, #tpu.memory_space<vmem>>, vector<8x8xf32>
    tpu.vector_store %arg10[%c0_24, %c8], %77 {strides = array<i32>} : memref<8x32xf32, #tpu.memory_space<vmem>>, vector<8x8xf32>,
    %79 = vector.extract_strided_slice %34 {offsets = [0, 16], sizes = [8, 8], strides = [1, 1]} : vector<8x96xf32> to vector<8x8xf32>
    %80 = vector.shape_cast %79 : vector<8x8xf32> to vector<1x8x8xf32>
    %81 = vector.extract_strided_slice %34 {offsets = [0, 48], sizes = [8, 8], strides = [1, 1]} : vector<8x96xf32> to vector<8x8xf32>
    %82 = vector.shape_cast %81 : vector<8x8xf32> to vector<1x8x8xf32>
    %83 = vector.extract_strided_slice %34 {offsets = [0, 80], sizes = [8, 8], strides = [1, 1]} : vector<8x96xf32> to vector<8x8xf32>
    %84 = vector.shape_cast %83 : vector<8x8xf32> to vector<1x8x8xf32>
    "tpu.trace_start"() <{level = 10 : i32, message = "bqd,bkd->bqk"}> : () -> ()
    %cst_25 = arith.constant dense<0.000000e+00> : vector<1x8x8xf32>
    %85 = tpu.matmul %80, %82, %cst_25 {dimension_numbers = #tpu.dot_dimension_numbers<[2], [2], [1], [1], [0, 0, 0, 1, 1, 1], [0], [0]>} : vector<1x8x8xf32>, vector<1x8x8xf32>, vector<1x8x8xf32> -> vector<1x8x8xf32>
    "tpu.trace_stop"() : () -> ()
    %cst_26 = arith.constant 0.353553385 : f32
    %86 = vector.broadcast %cst_26 : f32 to vector<1x8x8xf32>
    %87 = arith.mulf %85, %86 : vector<1x8x8xf32>
    %cst_27 = arith.constant dense<0xFF800000> : vector<1x8xf32>
    %88 = vector.multi_reduction <maximumf>, %87, %cst_27 [2] : vector<1x8x8xf32> to vector<1x8xf32>
    %89 = vector.shape_cast %88 : vector<1x8xf32> to vector<1x8x1xf32>
    %90 = vector.broadcast %89 : vector<1x8x1xf32> to vector<1x8x8xf32>
    %91 = arith.subf %87, %90 : vector<1x8x8xf32>
    %92 = math.exp %91 : vector<1x8x8xf32>
    %cst_28 = arith.constant dense<0.000000e+00> : vector<1x8xf32>
    %93 = vector.multi_reduction <add>, %92, %cst_28 [2] : vector<1x8x8xf32> to vector<1x8xf32>
    %94 = vector.shape_cast %93 : vector<1x8xf32> to vector<1x8x1xf32>
    %95 = tpu.reciprocal %94 : vector<1x8x1xf32> -> vector<1x8x1xf32>
    %96 = vector.broadcast %95 : vector<1x8x1xf32> to vector<1x8x8xf32>
    %97 = arith.mulf %92, %96 : vector<1x8x8xf32>
    "tpu.trace_start"() <{level = 10 : i32, message = "bqk,bkd->bqd"}> : () -> ()
    %cst_29 = arith.constant dense<0.000000e+00> : vector<1x8x8xf32>
    %98 = tpu.matmul %97, %84, %cst_29 {dimension_numbers = #tpu.dot_dimension_numbers<[2], [1], [1], [2], [0, 0, 0, 1, 1, 2], [0], [0]>} : vector<1x8x8xf32>, vector<1x8x8xf32>, vector<1x8x8xf32> -> vector<1x8x8xf32>
    "tpu.trace_stop"() : () -> ()
    %99 = vector.shape_cast %98 : vector<1x8x8xf32> to vector<8x8xf32>
    %c0_30 = arith.constant 0 : index
    %c16 = arith.constant 16 : index
    %100 = vector.load %arg10[%c0_30, %c16] : memref<8x32xf32, #tpu.memory_space<vmem>>, vector<8x8xf32>
    tpu.vector_store %arg10[%c0_30, %c16], %99 {strides = array<i32>} : memref<8x32xf32, #tpu.memory_space<vmem>>, vector<8x8xf32>,
    %101 = vector.extract_strided_slice %34 {offsets = [0, 24], sizes = [8, 8], strides = [1, 1]} : vector<8x96xf32> to vector<8x8xf32>
    %102 = vector.shape_cast %101 : vector<8x8xf32> to vector<1x8x8xf32>
    %103 = vector.extract_strided_slice %34 {offsets = [0, 56], sizes = [8, 8], strides = [1, 1]} : vector<8x96xf32> to vector<8x8xf32>
    %104 = vector.shape_cast %103 : vector<8x8xf32> to vector<1x8x8xf32>
    %105 = vector.extract_strided_slice %34 {offsets = [0, 88], sizes = [8, 8], strides = [1, 1]} : vector<8x96xf32> to vector<8x8xf32>
    %106 = vector.shape_cast %105 : vector<8x8xf32> to vector<1x8x8xf32>
    "tpu.trace_start"() <{level = 10 : i32, message = "bqd,bkd->bqk"}> : () -> ()
    %cst_31 = arith.constant dense<0.000000e+00> : vector<1x8x8xf32>
    %107 = tpu.matmul %102, %104, %cst_31 {dimension_numbers = #tpu.dot_dimension_numbers<[2], [2], [1], [1], [0, 0, 0, 1, 1, 1], [0], [0]>} : vector<1x8x8xf32>, vector<1x8x8xf32>, vector<1x8x8xf32> -> vector<1x8x8xf32>
    "tpu.trace_stop"() : () -> ()
    %cst_32 = arith.constant 0.353553385 : f32
    %108 = vector.broadcast %cst_32 : f32 to vector<1x8x8xf32>
    %109 = arith.mulf %107, %108 : vector<1x8x8xf32>
    %cst_33 = arith.constant dense<0xFF800000> : vector<1x8xf32>
    %110 = vector.multi_reduction <maximumf>, %109, %cst_33 [2] : vector<1x8x8xf32> to vector<1x8xf32>
    %111 = vector.shape_cast %110 : vector<1x8xf32> to vector<1x8x1xf32>
    %112 = vector.broadcast %111 : vector<1x8x1xf32> to vector<1x8x8xf32>
    %113 = arith.subf %109, %112 : vector<1x8x8xf32>
    %114 = math.exp %113 : vector<1x8x8xf32>
    %cst_34 = arith.constant dense<0.000000e+00> : vector<1x8xf32>
    %115 = vector.multi_reduction <add>, %114, %cst_34 [2] : vector<1x8x8xf32> to vector<1x8xf32>
    %116 = vector.shape_cast %115 : vector<1x8xf32> to vector<1x8x1xf32>
    %117 = tpu.reciprocal %116 : vector<1x8x1xf32> -> vector<1x8x1xf32>
    %118 = vector.broadcast %117 : vector<1x8x1xf32> to vector<1x8x8xf32>
    %119 = arith.mulf %114, %118 : vector<1x8x8xf32>
    "tpu.trace_start"() <{level = 10 : i32, message = "bqk,bkd->bqd"}> : () -> ()
    %cst_35 = arith.constant dense<0.000000e+00> : vector<1x8x8xf32>
    %120 = tpu.matmul %119, %106, %cst_35 {dimension_numbers = #tpu.dot_dimension_numbers<[2], [1], [1], [2], [0, 0, 0, 1, 1, 2], [0], [0]>} : vector<1x8x8xf32>, vector<1x8x8xf32>, vector<1x8x8xf32> -> vector<1x8x8xf32>
    "tpu.trace_stop"() : () -> ()
    %121 = vector.shape_cast %120 : vector<1x8x8xf32> to vector<8x8xf32>
    %c0_36 = arith.constant 0 : index
    %c24 = arith.constant 24 : index
    %122 = vector.load %arg10[%c0_36, %c24] : memref<8x32xf32, #tpu.memory_space<vmem>>, vector<8x8xf32>
    tpu.vector_store %arg10[%c0_36, %c24], %121 {strides = array<i32>} : memref<8x32xf32, #tpu.memory_space<vmem>>, vector<8x8xf32>,
    %c0_37 = arith.constant 0 : index
    %c0_38 = arith.constant 0 : index
    %123 = vector.load %arg10[%c0_37, %c0_38] : memref<8x32xf32, #tpu.memory_space<vmem>>, vector<8x32xf32>
    %c0_39 = arith.constant 0 : index
    %c0_40 = arith.constant 0 : index
    %124 = vector.load %arg6[%c0_39, %c0_40] : memref<32x32xf32, #tpu.memory_space<vmem>>, vector<32x32xf32>
    %cst_41 = arith.constant dense<0.000000e+00> : vector<8x32xf32>
    %125 = tpu.matmul %123, %124, %cst_41 {dimension_numbers = #tpu.dot_dimension_numbers<[1], [0], [0], [1], [0, 0, 1, 1], [], []>} : vector<8x32xf32>, vector<32x32xf32>, vector<8x32xf32> -> vector<8x32xf32>
    %126 = vector.broadcast %4 : vector<1x32xf32> to vector<8x32xf32>
    %127 = arith.addf %125, %126 : vector<8x32xf32>
    %128 = arith.addf %0, %127 : vector<8x32xf32>
    %cst_42 = arith.constant dense<0.000000e+00> : vector<8xf32>
    %129 = vector.multi_reduction <add>, %128, %cst_42 [1] : vector<8x32xf32> to vector<8xf32>
    %130 = vector.shape_cast %129 : vector<8xf32> to vector<8x1xf32>
    %cst_43 = arith.constant 3.200000e+01 : f32
    %131 = vector.broadcast %cst_43 : f32 to vector<8x1xf32>
    %132 = arith.divf %130, %131 : vector<8x1xf32>
    %133 = vector.broadcast %132 : vector<8x1xf32> to vector<8x32xf32>
    %134 = arith.subf %128, %133 : vector<8x32xf32>
    %135 = arith.mulf %134, %134 : vector<8x32xf32>
    %cst_44 = arith.constant dense<0.000000e+00> : vector<8xf32>
    %136 = vector.multi_reduction <add>, %135, %cst_44 [1] : vector<8x32xf32> to vector<8xf32>
    %137 = vector.shape_cast %136 : vector<8xf32> to vector<8x1xf32>
    %cst_45 = arith.constant 3.200000e+01 : f32
    %138 = vector.broadcast %cst_45 : f32 to vector<8x1xf32>
    %139 = arith.divf %137, %138 : vector<8x1xf32>
    %cst_46 = arith.constant 9.99999974E-6 : f32
    %140 = vector.broadcast %cst_46 : f32 to vector<8x1xf32>
    %141 = arith.addf %139, %140 : vector<8x1xf32>
    %142 = math.rsqrt %141 : vector<8x1xf32>
    %143 = vector.broadcast %132 : vector<8x1xf32> to vector<8x32xf32>
    %144 = arith.subf %128, %143 : vector<8x32xf32>
    %145 = vector.broadcast %142 : vector<8x1xf32> to vector<8x32xf32>
    %146 = arith.mulf %144, %145 : vector<8x32xf32>
    %147 = vector.broadcast %5 : vector<1x32xf32> to vector<8x32xf32>
    %148 = arith.mulf %146, %147 : vector<8x32xf32>
    %149 = vector.broadcast %6 : vector<1x32xf32> to vector<8x32xf32>
    %150 = arith.addf %148, %149 : vector<8x32xf32>
    %cst_47 = arith.constant 0.000000e+00 : f32
    %151 = vector.broadcast %cst_47 : f32 to vector<8x32xf32>
    %c0_48 = arith.constant 0 : index
    %c0_49 = arith.constant 0 : index
    %152 = vector.load %arg7[%c0_48, %c0_49] : memref<32x128xf32, #tpu.memory_space<vmem>>, vector<32x128xf32>
    %cst_50 = arith.constant dense<0.000000e+00> : vector<8x128xf32>
    %153 = tpu.matmul %150, %152, %cst_50 {dimension_numbers = #tpu.dot_dimension_numbers<[1], [0], [0], [1], [0, 0, 1, 1], [], []>} : vector<8x32xf32>, vector<32x128xf32>, vector<8x128xf32> -> vector<8x128xf32>
    %c0_51 = arith.constant 0 : index
    %c0_52 = arith.constant 0 : index
    %154 = vector.load %arg4[%c0_51, %c0_52] : memref<1x128xf32, #tpu.memory_space<vmem>>, vector<1x128xf32>
    %155 = vector.broadcast %154 : vector<1x128xf32> to vector<8x128xf32>
    %156 = arith.addf %153, %155 : vector<8x128xf32>
    %cst_53 = arith.constant 5.000000e-01 : f32
    %157 = vector.broadcast %cst_53 : f32 to vector<8x128xf32>
    %158 = arith.mulf %157, %156 : vector<8x128xf32>
    %cst_54 = arith.constant 0.707106769 : f32
    %159 = vector.broadcast %cst_54 : f32 to vector<8x128xf32>
    %160 = arith.mulf %156, %159 : vector<8x128xf32>
    %161 = math.erf %160 : vector<8x128xf32>
    %cst_55 = arith.constant 1.000000e+00 : f32
    %162 = vector.broadcast %cst_55 : f32 to vector<8x128xf32>
    %163 = arith.addf %162, %161 : vector<8x128xf32>
    %164 = arith.mulf %158, %163 : vector<8x128xf32>
    %c0_56 = arith.constant 0 : index
    %c0_57 = arith.constant 0 : index
    %165 = vector.load %arg8[%c0_56, %c0_57] : memref<128x32xf32, #tpu.memory_space<vmem>>, vector<128x32xf32>
    %cst_58 = arith.constant dense<0.000000e+00> : vector<8x32xf32>
    %166 = tpu.matmul %164, %165, %cst_58 {dimension_numbers = #tpu.dot_dimension_numbers<[1], [0], [0], [1], [0, 0, 1, 1], [], []>} : vector<8x128xf32>, vector<128x32xf32>, vector<8x32xf32> -> vector<8x32xf32>
    %167 = arith.addf %151, %166 : vector<8x32xf32>
    %168 = arith.addf %128, %167 : vector<8x32xf32>
    %169 = vector.broadcast %7 : vector<1x32xf32> to vector<8x32xf32>
    %170 = arith.addf %168, %169 : vector<8x32xf32>
    %c0_59 = arith.constant 0 : index
    %c0_60 = arith.constant 0 : index
    %171 = vector.load %arg9[%c0_59, %c0_60] : memref<8x32xf32, #tpu.memory_space<vmem>>, vector<8x32xf32>
    tpu.vector_store %arg9[%c0_59, %c0_60], %170 {strides = array<i32>} : memref<8x32xf32, #tpu.memory_space<vmem>>, vector<8x32xf32>,
    return
  }
  func.func @transform_0(%arg0: i32) -> (i32, i32) {
    %c0_i32 = arith.constant 0 : i32
    %c0_i32_0 = arith.constant 0 : i32
    return %arg0, %c0_i32 : i32, i32
  }
  func.func @transform_1(%arg0: i32) -> (i32, i32) {
    %c0_i32 = arith.constant 0 : i32
    %c0_i32_0 = arith.constant 0 : i32
    %c0_i32_1 = arith.constant 0 : i32
    return %c0_i32, %c0_i32_0 : i32, i32
  }
  func.func @transform_2(%arg0: i32) -> (i32, i32) {
    %c0_i32 = arith.constant 0 : i32
    %c0_i32_0 = arith.constant 0 : i32
    %c0_i32_1 = arith.constant 0 : i32
    return %c0_i32, %c0_i32_0 : i32, i32
  }
  func.func @transform_3(%arg0: i32) -> (i32, i32) {
    %c0_i32 = arith.constant 0 : i32
    %c0_i32_0 = arith.constant 0 : i32
    %c0_i32_1 = arith.constant 0 : i32
    return %c0_i32, %c0_i32_0 : i32, i32
  }
  func.func @transform_4(%arg0: i32) -> (i32, i32) {
    %c0_i32 = arith.constant 0 : i32
    %c0_i32_0 = arith.constant 0 : i32
    %c0_i32_1 = arith.constant 0 : i32
    return %c0_i32, %c0_i32_0 : i32, i32
  }
  func.func @transform_5(%arg0: i32) -> (i32, i32) {
    %c0_i32 = arith.constant 0 : i32
    %c0_i32_0 = arith.constant 0 : i32
    %c0_i32_1 = arith.constant 0 : i32
    return %c0_i32, %c0_i32_0 : i32, i32
  }
  func.func @transform_6(%arg0: i32) -> (i32, i32) {
    %c0_i32 = arith.constant 0 : i32
    %c0_i32_0 = arith.constant 0 : i32
    %c0_i32_1 = arith.constant 0 : i32
    return %c0_i32, %c0_i32_0 : i32, i32
  }
  func.func @transform_7(%arg0: i32) -> (i32, i32) {
    %c0_i32 = arith.constant 0 : i32
    %c0_i32_0 = arith.constant 0 : i32
    %c0_i32_1 = arith.constant 0 : i32
    return %c0_i32, %c0_i32_0 : i32, i32
  }
  func.func @transform_8(%arg0: i32) -> (i32, i32) {
    %c0_i32 = arith.constant 0 : i32
    %c0_i32_0 = arith.constant 0 : i32
    return %arg0, %c0_i32 : i32, i32
  }
}

module attributes {stable_mosaic.version = 11 : i64} {
  func.func @encoder_kernel(%arg0: i32, %arg1: memref<8x32xf32, #tpu.memory_space<vmem>>, %arg2: memref<6x32xf32, #tpu.memory_space<vmem>>, %arg3: memref<1x96xf32, #tpu.memory_space<vmem>>, %arg4: memref<1x128xf32, #tpu.memory_space<vmem>>, %arg5: memref<32x96xf32, #tpu.memory_space<vmem>>, %arg6: memref<32x32xf32, #tpu.memory_space<vmem>>, %arg7: memref<32x128xf32, #tpu.memory_space<vmem>>, %arg8: memref<128x32xf32, #tpu.memory_space<vmem>>, %arg9: memref<8x32xf32, #tpu.memory_space<vmem>>, %arg10: memref<8x32xf32, #tpu.memory_space<vmem>>) attributes {dimension_semantics = [#tpu.dimension_semantics<parallel>], iteration_bounds = array<i64: 2>, scalar_prefetch = 0 : i64, scratch_operands = 1 : i64, tpu.core_type = #tpu.core_type<tc>, window_params = [{transform_indices = @transform_0, window_bounds = array<i64: 8, 32>}, {pipeline_mode = #tpu.pipeline_mode<synchronous>, transform_indices = @transform_1, window_bounds = array<i64: 6, 32>}, {pipeline_mode = #tpu.pipeline_mode<synchronous>, transform_indices = @transform_2, window_bounds = array<i64: 1, 96>}, {pipeline_mode = #tpu.pipeline_mode<synchronous>, transform_indices = @transform_3, window_bounds = array<i64: 1, 128>}, {pipeline_mode = #tpu.pipeline_mode<synchronous>, transform_indices = @transform_4, window_bounds = array<i64: 32, 96>}, {pipeline_mode = #tpu.pipeline_mode<synchronous>, transform_indices = @transform_5, window_bounds = array<i64: 32, 32>}, {pipeline_mode = #tpu.pipeline_mode<synchronous>, transform_indices = @transform_6, window_bounds = array<i64: 32, 128>}, {pipeline_mode = #tpu.pipeline_mode<synchronous>, transform_indices = @transform_7, window_bounds = array<i64: 128, 32>}, {transform_indices = @transform_8, window_bounds = array<i64: 8, 32>}]} {
    %c0 = arith.constant 0 : index
    %c0_0 = arith.constant 0 : index
    %0 = vector.load %arg1[%c0, %c0_0] : memref<8x32xf32, #tpu.memory_space<vmem>>, vector<8x32xf32>
    %c0_1 = arith.constant 0 : index
    %c0_2 = arith.constant 0 : index
    %1 = vector.load %arg2[%c0_1, %c0_2] : memref<6x32xf32, #tpu.memory_space<vmem>>, vector<6x32xf32>
    %2 = vector.extract_strided_slice %1 {offsets = [0, 0], sizes = [1, 32], strides = [1, 1]} : vector<6x32xf32> to vector<1x32xf32>
    %3 = vector.extract_strided_slice %1 {offsets = [1, 0], sizes = [1, 32], strides = [1, 1]} : vector<6x32xf32> to vector<1x32xf32>
    %4 = vector.extract_strided_slice %1 {offsets = [2, 0], sizes = [1, 32], strides = [1, 1]} : vector<6x32xf32> to vector<1x32xf32>
    %5 = vector.extract_strided_slice %1 {offsets = [3, 0], sizes = [1, 32], strides = [1, 1]} : vector<6x32xf32> to vector<1x32xf32>
    %6 = vector.extract_strided_slice %1 {offsets = [4, 0], sizes = [1, 32], strides = [1, 1]} : vector<6x32xf32> to vector<1x32xf32>
    %7 = vector.extract_strided_slice %1 {offsets = [5, 0], sizes = [1, 32], strides = [1, 1]} : vector<6x32xf32> to vector<1x32xf32>
    %cst = arith.constant dense<0.000000e+00> : vector<8xf32>
    %8 = vector.multi_reduction <add>, %0, %cst [1] : vector<8x32xf32> to vector<8xf32>
    %9 = vector.shape_cast %8 : vector<8xf32> to vector<8x1xf32>
    %cst_3 = arith.constant 3.200000e+01 : f32
    %10 = vector.broadcast %cst_3 : f32 to vector<8x1xf32>
    %11 = arith.divf %9, %10 : vector<8x1xf32>
    %12 = vector.broadcast %11 : vector<8x1xf32> to vector<8x32xf32>
    %13 = arith.subf %0, %12 : vector<8x32xf32>
    %14 = arith.mulf %13, %13 : vector<8x32xf32>
    %cst_4 = arith.constant dense<0.000000e+00> : vector<8xf32>
    %15 = vector.multi_reduction <add>, %14, %cst_4 [1] : vector<8x32xf32> to vector<8xf32>
    %16 = vector.shape_cast %15 : vector<8xf32> to vector<8x1xf32>
    %cst_5 = arith.constant 3.200000e+01 : f32
    %17 = vector.broadcast %cst_5 : f32 to vector<8x1xf32>
    %18 = arith.divf %16, %17 : vector<8x1xf32>
    %cst_6 = arith.constant 9.99999974E-6 : f32
    %19 = vector.broadcast %cst_6 : f32 to vector<8x1xf32>
    %20 = arith.addf %18, %19 : vector<8x1xf32>
    %21 = math.rsqrt %20 : vector<8x1xf32>
    %22 = vector.broadcast %11 : vector<8x1xf32> to vector<8x32xf32>
    %23 = arith.subf %0, %22 : vector<8x32xf32>
    %24 = vector.broadcast %21 : vector<8x1xf32> to vector<8x32xf32>
    %25 = arith.mulf %23, %24 : vector<8x32xf32>
    %26 = vector.broadcast %2 : vector<1x32xf32> to vector<8x32xf32>
    %27 = arith.mulf %25, %26 : vector<8x32xf32>
    %28 = vector.broadcast %3 : vector<1x32xf32> to vector<8x32xf32>
    %29 = arith.addf %27, %28 : vector<8x32xf32>
    %c0_7 = arith.constant 0 : index
    %c0_8 = arith.constant 0 : index
    %30 = vector.load %arg5[%c0_7, %c0_8] : memref<32x96xf32, #tpu.memory_space<vmem>>, vector<32x96xf32>
    %cst_9 = arith.constant dense<0.000000e+00> : vector<8x96xf32>
    %31 = tpu.matmul %29, %30, %cst_9 {dimension_numbers = #tpu.dot_dimension_numbers<[1], [0], [0], [1], [0, 0, 1, 1], [], []>} : vector<8x32xf32>, vector<32x96xf32>, vector<8x96xf32> -> vector<8x96xf32>
    %c0_10 = arith.constant 0 : index
    %c0_11 = arith.constant 0 : index
    %32 = vector.load %arg3[%c0_10, %c0_11] : memref<1x96xf32, #tpu.memory_space<vmem>>, vector<1x96xf32>
    %33 = vector.broadcast %32 : vector<1x96xf32> to vector<8x96xf32>
    %34 = arith.addf %31, %33 : vector<8x96xf32>
    %35 = vector.extract_strided_slice %34 {offsets = [0, 0], sizes = [8, 8], strides = [1, 1]} : vector<8x96xf32> to vector<8x8xf32>
    %36 = vector.shape_cast %35 : vector<8x8xf32> to vector<1x8x8xf32>
    %37 = vector.extract_strided_slice %34 {offsets = [0, 32], sizes = [8, 8], strides = [1, 1]} : vector<8x96xf32> to vector<8x8xf32>
    %38 = vector.shape_cast %37 : vector<8x8xf32> to vector<1x8x8xf32>
    %39 = vector.extract_strided_slice %34 {offsets = [0, 64], sizes = [8, 8], strides = [1, 1]} : vector<8x96xf32> to vector<8x8xf32>
    %40 = vector.shape_cast %39 : vector<8x8xf32> to vector<1x8x8xf32>
    "tpu.trace_start"() <{level = 10 : i32, message = "bqd,bkd->bqk"}> : () -> ()
    %cst_12 = arith.constant dense<0.000000e+00> : vector<1x8x8xf32>
    %41 = tpu.matmul %36, %38, %cst_12 {dimension_numbers = #tpu.dot_dimension_numbers<[2], [2], [1], [1], [0, 0, 0, 1, 1, 1], [0], [0]>} : vector<1x8x8xf32>, vector<1x8x8xf32>, vector<1x8x8xf32> -> vector<1x8x8xf32>
    "tpu.trace_stop"() : () -> ()
    %cst_13 = arith.constant 0.353553385 : f32
    %42 = vector.broadcast %cst_13 : f32 to vector<1x8x8xf32>
    %43 = arith.mulf %41, %42 : vector<1x8x8xf32>
    %cst_14 = arith.constant dense<0xFF800000> : vector<1x8xf32>
    %44 = vector.multi_reduction <maximumf>, %43, %cst_14 [2] : vector<1x8x8xf32> to vector<1x8xf32>
    %45 = vector.shape_cast %44 : vector<1x8xf32> to vector<1x8x1xf32>
    %46 = vector.broadcast %45 : vector<1x8x1xf32> to vector<1x8x8xf32>
    %47 = arith.subf %43, %46 : vector<1x8x8xf32>
    %48 = math.exp %47 : vector<1x8x8xf32>
    %cst_15 = arith.constant dense<0.000000e+00> : vector<1x8xf32>
    %49 = vector.multi_reduction <add>, %48, %cst_15 [2] : vector<1x8x8xf32> to vector<1x8xf32>
    %50 = vector.shape_cast %49 : vector<1x8xf32> to vector<1x8x1xf32>
    %51 = tpu.reciprocal %50 : vector<1x8x1xf32> -> vector<1x8x1xf32>
    %52 = vector.broadcast %51 : vector<1x8x1xf32> to vector<1x8x8xf32>
    %53 = arith.mulf %48, %52 : vector<1x8x8xf32>
    "tpu.trace_start"() <{level = 10 : i32, message = "bqk,bkd->bqd"}> : () -> ()
    %cst_16 = arith.constant dense<0.000000e+00> : vector<1x8x8xf32>
    %54 = tpu.matmul %53, %40, %cst_16 {dimension_numbers = #tpu.dot_dimension_numbers<[2], [1], [1], [2], [0, 0, 0, 1, 1, 2], [0], [0]>} : vector<1x8x8xf32>, vector<1x8x8xf32>, vector<1x8x8xf32> -> vector<1x8x8xf32>
    "tpu.trace_stop"() : () -> ()
    %55 = vector.shape_cast %54 : vector<1x8x8xf32> to vector<8x8xf32>
    %c0_17 = arith.constant 0 : index
    %c0_18 = arith.constant 0 : index
    %56 = vector.load %arg10[%c0_17, %c0_18] : memref<8x32xf32, #tpu.memory_space<vmem>>, vector<8x8xf32>
    tpu.vector_store %arg10[%c0_17, %c0_18], %55 {strides = array<i32>} : memref<8x32xf32, #tpu.memory_space<vmem>>, vector<8x8xf32>,
    %57 = vector.extract_strided_slice %34 {offsets = [0, 8], sizes = [8, 8], strides = [1, 1]} : vector<8x96xf32> to vector<8x8xf32>
    %58 = vector.shape_cast %57 : vector<8x8xf32> to vector<1x8x8xf32>
    %59 = vector.extract_strided_slice %34 {offsets = [0, 40], sizes = [8, 8], strides = [1, 1]} : vector<8x96xf32> to vector<8x8xf32>
    %60 = vector.shape_cast %59 : vector<8x8xf32> to vector<1x8x8xf32>
    %61 = vector.extract_strided_slice %34 {offsets = [0, 72], sizes = [8, 8], strides = [1, 1]} : vector<8x96xf32> to vector<8x8xf32>
    %62 = vector.shape_cast %61 : vector<8x8xf32> to vector<1x8x8xf32>
    "tpu.trace_start"() <{level = 10 : i32, message = "bqd,bkd->bqk"}> : () -> ()
    %cst_19 = arith.constant dense<0.000000e+00> : vector<1x8x8xf32>
    %63 = tpu.matmul %58, %60, %cst_19 {dimension_numbers = #tpu.dot_dimension_numbers<[2], [2], [1], [1], [0, 0, 0, 1, 1, 1], [0], [0]>} : vector<1x8x8xf32>, vector<1x8x8xf32>, vector<1x8x8xf32> -> vector<1x8x8xf32>
    "tpu.trace_stop"() : () -> ()
    %cst_20 = arith.constant 0.353553385 : f32
    %64 = vector.broadcast %cst_20 : f32 to vector<1x8x8xf32>
    %65 = arith.mulf %63, %64 : vector<1x8x8xf32>
    %cst_21 = arith.constant dense<0xFF800000> : vector<1x8xf32>
    %66 = vector.multi_reduction <maximumf>, %65, %cst_21 [2] : vector<1x8x8xf32> to vector<1x8xf32>
    %67 = vector.shape_cast %66 : vector<1x8xf32> to vector<1x8x1xf32>
    %68 = vector.broadcast %67 : vector<1x8x1xf32> to vector<1x8x8xf32>
    %69 = arith.subf %65, %68 : vector<1x8x8xf32>
    %70 = math.exp %69 : vector<1x8x8xf32>
    %cst_22 = arith.constant dense<0.000000e+00> : vector<1x8xf32>
    %71 = vector.multi_reduction <add>, %70, %cst_22 [2] : vector<1x8x8xf32> to vector<1x8xf32>
    %72 = vector.shape_cast %71 : vector<1x8xf32> to vector<1x8x1xf32>
    %73 = tpu.reciprocal %72 : vector<1x8x1xf32> -> vector<1x8x1xf32>
    %74 = vector.broadcast %73 : vector<1x8x1xf32> to vector<1x8x8xf32>
    %75 = arith.mulf %70, %74 : vector<1x8x8xf32>
    "tpu.trace_start"() <{level = 10 : i32, message = "bqk,bkd->bqd"}> : () -> ()
    %cst_23 = arith.constant dense<0.000000e+00> : vector<1x8x8xf32>
    %76 = tpu.matmul %75, %62, %cst_23 {dimension_numbers = #tpu.dot_dimension_numbers<[2], [1], [1], [2], [0, 0, 0, 1, 1, 2], [0], [0]>} : vector<1x8x8xf32>, vector<1x8x8xf32>, vector<1x8x8xf32> -> vector<1x8x8xf32>
    "tpu.trace_stop"() : () -> ()
    %77 = vector.shape_cast %76 : vector<1x8x8xf32> to vector<8x8xf32>
    %c0_24 = arith.constant 0 : index
    %c8 = arith.constant 8 : index
    %78 = vector.load %arg10[%c0_24, %c8] : memref<8x32xf32, #tpu.memory_space<vmem>>, vector<8x8xf32>
    tpu.vector_store %arg10[%c0_24, %c8], %77 {strides = array<i32>} : memref<8x32xf32, #tpu.memory_space<vmem>>, vector<8x8xf32>,
    %79 = vector.extract_strided_slice %34 {offsets = [0, 16], sizes = [8, 8], strides = [1, 1]} : vector<8x96xf32> to vector<8x8xf32>
    %80 = vector.shape_cast %79 : vector<8x8xf32> to vector<1x8x8xf32>
    %81 = vector.extract_strided_slice %34 {offsets = [0, 48], sizes = [8, 8], strides = [1, 1]} : vector<8x96xf32> to vector<8x8xf32>
    %82 = vector.shape_cast %81 : vector<8x8xf32> to vector<1x8x8xf32>
    %83 = vector.extract_strided_slice %34 {offsets = [0, 80], sizes = [8, 8], strides = [1, 1]} : vector<8x96xf32> to vector<8x8xf32>
    %84 = vector.shape_cast %83 : vector<8x8xf32> to vector<1x8x8xf32>
    "tpu.trace_start"() <{level = 10 : i32, message = "bqd,bkd->bqk"}> : () -> ()
    %cst_25 = arith.constant dense<0.000000e+00> : vector<1x8x8xf32>
    %85 = tpu.matmul %80, %82, %cst_25 {dimension_numbers = #tpu.dot_dimension_numbers<[2], [2], [1], [1], [0, 0, 0, 1, 1, 1], [0], [0]>} : vector<1x8x8xf32>, vector<1x8x8xf32>, vector<1x8x8xf32> -> vector<1x8x8xf32>
    "tpu.trace_stop"() : () -> ()
    %cst_26 = arith.constant 0.353553385 : f32
    %86 = vector.broadcast %cst_26 : f32 to vector<1x8x8xf32>
    %87 = arith.mulf %85, %86 : vector<1x8x8xf32>
    %cst_27 = arith.constant dense<0xFF800000> : vector<1x8xf32>
    %88 = vector.multi_reduction <maximumf>, %87, %cst_27 [2] : vector<1x8x8xf32> to vector<1x8xf32>
    %89 = vector.shape_cast %88 : vector<1x8xf32> to vector<1x8x1xf32>
    %90 = vector.broadcast %89 : vector<1x8x1xf32> to vector<1x8x8xf32>
    %91 = arith.subf %87, %90 : vector<1x8x8xf32>
    %92 = math.exp %91 : vector<1x8x8xf32>
    %cst_28 = arith.constant dense<0.000000e+00> : vector<1x8xf32>
    %93 = vector.multi_reduction <add>, %92, %cst_28 [2] : vector<1x8x8xf32> to vector<1x8xf32>
    %94 = vector.shape_cast %93 : vector<1x8xf32> to vector<1x8x1xf32>
    %95 = tpu.reciprocal %94 : vector<1x8x1xf32> -> vector<1x8x1xf32>
    %96 = vector.broadcast %95 : vector<1x8x1xf32> to vector<1x8x8xf32>
    %97 = arith.mulf %92, %96 : vector<1x8x8xf32>
    "tpu.trace_start"() <{level = 10 : i32, message = "bqk,bkd->bqd"}> : () -> ()
    %cst_29 = arith.constant dense<0.000000e+00> : vector<1x8x8xf32>
    %98 = tpu.matmul %97, %84, %cst_29 {dimension_numbers = #tpu.dot_dimension_numbers<[2], [1], [1], [2], [0, 0, 0, 1, 1, 2], [0], [0]>} : vector<1x8x8xf32>, vector<1x8x8xf32>, vector<1x8x8xf32> -> vector<1x8x8xf32>
    "tpu.trace_stop"() : () -> ()
    %99 = vector.shape_cast %98 : vector<1x8x8xf32> to vector<8x8xf32>
    %c0_30 = arith.constant 0 : index
    %c16 = arith.constant 16 : index
    %100 = vector.load %arg10[%c0_30, %c16] : memref<8x32xf32, #tpu.memory_space<vmem>>, vector<8x8xf32>
    tpu.vector_store %arg10[%c0_30, %c16], %99 {strides = array<i32>} : memref<8x32xf32, #tpu.memory_space<vmem>>, vector<8x8xf32>,
    %101 = vector.extract_strided_slice %34 {offsets = [0, 24], sizes = [8, 8], strides = [1, 1]} : vector<8x96xf32> to vector<8x8xf32>
    %102 = vector.shape_cast %101 : vector<8x8xf32> to vector<1x8x8xf32>
    %103 = vector.extract_strided_slice %34 {offsets = [0, 56], sizes = [8, 8], strides = [1, 1]} : vector<8x96xf32> to vector<8x8xf32>
    %104 = vector.shape_cast %103 : vector<8x8xf32> to vector<1x8x8xf32>
    %105 = vector.extract_strided_slice %34 {offsets = [0, 88], sizes = [8, 8], strides = [1, 1]} : vector<8x96xf32> to vector<8x8xf32>
    %106 = vector.shape_cast %105 : vector<8x8xf32> to vector<1x8x8xf32>
    "tpu.trace_start"() <{level = 10 : i32, message = "bqd,bkd->bqk"}> : () -> ()
    %cst_31 = arith.constant dense<0.000000e+00> : vector<1x8x8xf32>
    %107 = tpu.matmul %102, %104, %cst_31 {dimension_numbers = #tpu.dot_dimension_numbers<[2], [2], [1], [1], [0, 0, 0, 1, 1, 1], [0], [0]>} : vector<1x8x8xf32>, vector<1x8x8xf32>, vector<1x8x8xf32> -> vector<1x8x8xf32>
    "tpu.trace_stop"() : () -> ()
    %cst_32 = arith.constant 0.353553385 : f32
    %108 = vector.broadcast %cst_32 : f32 to vector<1x8x8xf32>
    %109 = arith.mulf %107, %108 : vector<1x8x8xf32>
    %cst_33 = arith.constant dense<0xFF800000> : vector<1x8xf32>
    %110 = vector.multi_reduction <maximumf>, %109, %cst_33 [2] : vector<1x8x8xf32> to vector<1x8xf32>
    %111 = vector.shape_cast %110 : vector<1x8xf32> to vector<1x8x1xf32>
    %112 = vector.broadcast %111 : vector<1x8x1xf32> to vector<1x8x8xf32>
    %113 = arith.subf %109, %112 : vector<1x8x8xf32>
    %114 = math.exp %113 : vector<1x8x8xf32>
    %cst_34 = arith.constant dense<0.000000e+00> : vector<1x8xf32>
    %115 = vector.multi_reduction <add>, %114, %cst_34 [2] : vector<1x8x8xf32> to vector<1x8xf32>
    %116 = vector.shape_cast %115 : vector<1x8xf32> to vector<1x8x1xf32>
    %117 = tpu.reciprocal %116 : vector<1x8x1xf32> -> vector<1x8x1xf32>
    %118 = vector.broadcast %117 : vector<1x8x1xf32> to vector<1x8x8xf32>
    %119 = arith.mulf %114, %118 : vector<1x8x8xf32>
    "tpu.trace_start"() <{level = 10 : i32, message = "bqk,bkd->bqd"}> : () -> ()
    %cst_35 = arith.constant dense<0.000000e+00> : vector<1x8x8xf32>
    %120 = tpu.matmul %119, %106, %cst_35 {dimension_numbers = #tpu.dot_dimension_numbers<[2], [1], [1], [2], [0, 0, 0, 1, 1, 2], [0], [0]>} : vector<1x8x8xf32>, vector<1x8x8xf32>, vector<1x8x8xf32> -> vector<1x8x8xf32>
    "tpu.trace_stop"() : () -> ()
    %121 = vector.shape_cast %120 : vector<1x8x8xf32> to vector<8x8xf32>
    %c0_36 = arith.constant 0 : index
    %c24 = arith.constant 24 : index
    %122 = vector.load %arg10[%c0_36, %c24] : memref<8x32xf32, #tpu.memory_space<vmem>>, vector<8x8xf32>
    tpu.vector_store %arg10[%c0_36, %c24], %121 {strides = array<i32>} : memref<8x32xf32, #tpu.memory_space<vmem>>, vector<8x8xf32>,
    %c0_37 = arith.constant 0 : index
    %c0_38 = arith.constant 0 : index
    %123 = vector.load %arg10[%c0_37, %c0_38] : memref<8x32xf32, #tpu.memory_space<vmem>>, vector<8x32xf32>
    %c0_39 = arith.constant 0 : index
    %c0_40 = arith.constant 0 : index
    %124 = vector.load %arg6[%c0_39, %c0_40] : memref<32x32xf32, #tpu.memory_space<vmem>>, vector<32x32xf32>
    %cst_41 = arith.constant dense<0.000000e+00> : vector<8x32xf32>
    %125 = tpu.matmul %123, %124, %cst_41 {dimension_numbers = #tpu.dot_dimension_numbers<[1], [0], [0], [1], [0, 0, 1, 1], [], []>} : vector<8x32xf32>, vector<32x32xf32>, vector<8x32xf32> -> vector<8x32xf32>
    %126 = vector.broadcast %4 : vector<1x32xf32> to vector<8x32xf32>
    %127 = arith.addf %125, %126 : vector<8x32xf32>
    %128 = arith.addf %0, %127 : vector<8x32xf32>
    %cst_42 = arith.constant dense<0.000000e+00> : vector<8xf32>
    %129 = vector.multi_reduction <add>, %128, %cst_42 [1] : vector<8x32xf32> to vector<8xf32>
    %130 = vector.shape_cast %129 : vector<8xf32> to vector<8x1xf32>
    %cst_43 = arith.constant 3.200000e+01 : f32
    %131 = vector.broadcast %cst_43 : f32 to vector<8x1xf32>
    %132 = arith.divf %130, %131 : vector<8x1xf32>
    %133 = vector.broadcast %132 : vector<8x1xf32> to vector<8x32xf32>
    %134 = arith.subf %128, %133 : vector<8x32xf32>
    %135 = arith.mulf %134, %134 : vector<8x32xf32>
    %cst_44 = arith.constant dense<0.000000e+00> : vector<8xf32>
    %136 = vector.multi_reduction <add>, %135, %cst_44 [1] : vector<8x32xf32> to vector<8xf32>
    %137 = vector.shape_cast %136 : vector<8xf32> to vector<8x1xf32>
    %cst_45 = arith.constant 3.200000e+01 : f32
    %138 = vector.broadcast %cst_45 : f32 to vector<8x1xf32>
    %139 = arith.divf %137, %138 : vector<8x1xf32>
    %cst_46 = arith.constant 9.99999974E-6 : f32
    %140 = vector.broadcast %cst_46 : f32 to vector<8x1xf32>
    %141 = arith.addf %139, %140 : vector<8x1xf32>
    %142 = math.rsqrt %141 : vector<8x1xf32>
    %143 = vector.broadcast %132 : vector<8x1xf32> to vector<8x32xf32>
    %144 = arith.subf %128, %143 : vector<8x32xf32>
    %145 = vector.broadcast %142 : vector<8x1xf32> to vector<8x32xf32>
    %146 = arith.mulf %144, %145 : vector<8x32xf32>
    %147 = vector.broadcast %5 : vector<1x32xf32> to vector<8x32xf32>
    %148 = arith.mulf %146, %147 : vector<8x32xf32>
    %149 = vector.broadcast %6 : vector<1x32xf32> to vector<8x32xf32>
    %150 = arith.addf %148, %149 : vector<8x32xf32>
    %cst_47 = arith.constant 0.000000e+00 : f32
    %151 = vector.broadcast %cst_47 : f32 to vector<8x32xf32>
    %c0_48 = arith.constant 0 : index
    %c0_49 = arith.constant 0 : index
    %152 = vector.load %arg7[%c0_48, %c0_49] : memref<32x128xf32, #tpu.memory_space<vmem>>, vector<32x128xf32>
    %cst_50 = arith.constant dense<0.000000e+00> : vector<8x128xf32>
    %153 = tpu.matmul %150, %152, %cst_50 {dimension_numbers = #tpu.dot_dimension_numbers<[1], [0], [0], [1], [0, 0, 1, 1], [], []>} : vector<8x32xf32>, vector<32x128xf32>, vector<8x128xf32> -> vector<8x128xf32>
    %c0_51 = arith.constant 0 : index
    %c0_52 = arith.constant 0 : index
    %154 = vector.load %arg4[%c0_51, %c0_52] : memref<1x128xf32, #tpu.memory_space<vmem>>, vector<1x128xf32>
    %155 = vector.broadcast %154 : vector<1x128xf32> to vector<8x128xf32>
    %156 = arith.addf %153, %155 : vector<8x128xf32>
    %cst_53 = arith.constant 5.000000e-01 : f32
    %157 = vector.broadcast %cst_53 : f32 to vector<8x128xf32>
    %158 = arith.mulf %157, %156 : vector<8x128xf32>
    %cst_54 = arith.constant 0.707106769 : f32
    %159 = vector.broadcast %cst_54 : f32 to vector<8x128xf32>
    %160 = arith.mulf %156, %159 : vector<8x128xf32>
    %161 = math.erf %160 : vector<8x128xf32>
    %cst_55 = arith.constant 1.000000e+00 : f32
    %162 = vector.broadcast %cst_55 : f32 to vector<8x128xf32>
    %163 = arith.addf %162, %161 : vector<8x128xf32>
    %164 = arith.mulf %158, %163 : vector<8x128xf32>
    %c0_56 = arith.constant 0 : index
    %c0_57 = arith.constant 0 : index
    %165 = vector.load %arg8[%c0_56, %c0_57] : memref<128x32xf32, #tpu.memory_space<vmem>>, vector<128x32xf32>
    %cst_58 = arith.constant dense<0.000000e+00> : vector<8x32xf32>
    %166 = tpu.matmul %164, %165, %cst_58 {dimension_numbers = #tpu.dot_dimension_numbers<[1], [0], [0], [1], [0, 0, 1, 1], [], []>} : vector<8x128xf32>, vector<128x32xf32>, vector<8x32xf32> -> vector<8x32xf32>
    %167 = arith.addf %151, %166 : vector<8x32xf32>
    %168 = arith.addf %128, %167 : vector<8x32xf32>
    %169 = vector.broadcast %7 : vector<1x32xf32> to vector<8x32xf32>
    %170 = arith.addf %168, %169 : vector<8x32xf32>
    %c0_59 = arith.constant 0 : index
    %c0_60 = arith.constant 0 : index
    %171 = vector.load %arg9[%c0_59, %c0_60] : memref<8x32xf32, #tpu.memory_space<vmem>>, vector<8x32xf32>
    tpu.vector_store %arg9[%c0_59, %c0_60], %170 {strides = array<i32>} : memref<8x32xf32, #tpu.memory_space<vmem>>, vector<8x32xf32>,
    return
  }
  func.func @transform_0(%arg0: i32) -> (i32, i32) {
    %c0_i32 = arith.constant 0 : i32
    %c0_i32_0 = arith.constant 0 : i32
    return %arg0, %c0_i32 : i32, i32
  }
  func.func @transform_1(%arg0: i32) -> (i32, i32) {
    %c0_i32 = arith.constant 0 : i32
    %c0_i32_0 = arith.constant 0 : i32
    %c0_i32_1 = arith.constant 0 : i32
    return %c0_i32, %c0_i32_0 : i32, i32
  }
  func.func @transform_2(%arg0: i32) -> (i32, i32) {
    %c0_i32 = arith.constant 0 : i32
    %c0_i32_0 = arith.constant 0 : i32
    %c0_i32_1 = arith.constant 0 : i32
    return %c0_i32, %c0_i32_0 : i32, i32
  }
  func.func @transform_3(%arg0: i32) -> (i32, i32) {
    %c0_i32 = arith.constant 0 : i32
    %c0_i32_0 = arith.constant 0 : i32
    %c0_i32_1 = arith.constant 0 : i32
    return %c0_i32, %c0_i32_0 : i32, i32
  }
  func.func @transform_4(%arg0: i32) -> (i32, i32) {
    %c0_i32 = arith.constant 0 : i32
    %c0_i32_0 = arith.constant 0 : i32
    %c0_i32_1 = arith.constant 0 : i32
    return %c0_i32, %c0_i32_0 : i32, i32
  }
  func.func @transform_5(%arg0: i32) -> (i32, i32) {
    %c0_i32 = arith.constant 0 : i32
    %c0_i32_0 = arith.constant 0 : i32
    %c0_i32_1 = arith.constant 0 : i32
    return %c0_i32, %c0_i32_0 : i32, i32
  }
  func.func @transform_6(%arg0: i32) -> (i32, i32) {
    %c0_i32 = arith.constant 0 : i32
    %c0_i32_0 = arith.constant 0 : i32
    %c0_i32_1 = arith.constant 0 : i32
    return %c0_i32, %c0_i32_0 : i32, i32
  }
  func.func @transform_7(%arg0: i32) -> (i32, i32) {
    %c0_i32 = arith.constant 0 : i32
    %c0_i32_0 = arith.constant 0 : i32
    %c0_i32_1 = arith.constant 0 : i32
    return %c0_i32, %c0_i32_0 : i32, i32
  }
  func.func @transform_8(%arg0: i32) -> (i32, i32) {
    %c0_i32 = arith.constant 0 : i32
    %c0_i32_0 = arith.constant 0 : i32
    return %arg0, %c0_i32 : i32, i32
  }
}

</mosaic_0001>

<bundles_post_ra>
// kernel: tpu_custom_call.1
= control target key start
LH: loop header
LB: loop body
LE: loop exit
PB: predicated region body
PF: predicated region fallthrough
CT: control target
= control target key end

     0   :  { %13 = vsyncpa [#allocation4], 0  ;;  %s1442_s0 = inlined_call_operand.vmem [shape: f32[16,32], index: 0, kind: input, shape index: {}]   ;;  %s1443_s1 = inlined_call_operand.vmem [shape: f32[6,32], index: 1, kind: input, shape index: {}]   ;;  %s1444_s2 = inlined_call_operand.vmem [shape: f32[1,96], index: 2, kind: input, shape index: {}]   ;;  %s1445_s3 = inlined_call_operand.vmem [shape: f32[1,128], index: 3, kind: input, shape index: {}]   ;;  %s1446_s4 = inlined_call_operand.vmem [shape: f32[32,96], index: 4, kind: input, shape index: {}]   ;;  %s1447_s5 = inlined_call_operand.vmem [shape: f32[32,32], index: 5, kind: input, shape index: {}]   ;;  %s1448_s6 = inlined_call_operand.vmem [shape: f32[32,128], index: 6, kind: input, shape index: {}]   ;;  %s1449_s7 = inlined_call_operand.vmem [shape: f32[128,32], index: 7, kind: input, shape index: {}]   ;;  %s1450_s8 = inlined_call_operand.hbm [shape: f32[16,32], index: 8, kind: output, shape index: {}]  }
   0x1   :  { %15 = vsyncpa [#allocation4 + $0x1], 0  ;;  %s1179_s27 = smov 0   ;;  %s1181_s28 = smov 0  }
   0x2   :  { %s1183_s29 = smov 0   ;;  %s1185_s30 = smov 0  }
   0x3 LB: > { %s1200_s9 = sadd.s32 4294967295, %s1117_s30   ;;  %s949_s10 = sadd.s32 4294967294, %s1117_s30   ;;  %s1117_s30 = sphi %s1185_s30, %s1458_s30   ;;  %s1113_s29 = sphi %s1183_s29, %s1457_s29   ;;  %s1109_s28 = sphi %s1181_s28, %s1456_s28   ;;  %s1105_s27 = sphi %s1179_s27, %s1455_s27  }
   0x4   : > { %s1204_s11 = sadd.s32 1, %s1117_s30   ;;  %s201_s12 = sadd.s32 1, %s1113_s29 }
   0x5   : > { %s198_s13 = ssub.s32 %s1117_s30, %s1204_s11  ;;  %p211_p0 = scmp.ne.s32.totalorder %s1113_s29, %s1109_s28 }
   0x6   : > { %p199_p1 = scmp.eq.s32.totalorder %s198_s13, 0  ;;  %p212_p2 = scmp.eq.s32.totalorder %s1200_s9, 1 }
   0x7   : > { %p217_p3 = scmp.ne.s32.totalorder %s1109_s28, %s1105_s27  ;;  %p218_p4 = scmp.eq.s32.totalorder %s949_s10, 1 }
   0x8   : > { %s1215_s14 = scalar_select %p199_p1, %s1113_s29, %s201_s12  }
   0x9   : > { %p1217_p5 = por %p212_p2, %p211_p0  ;;  %p1221_p6 = por %p218_p4, %p217_p3 }
   0xa   : > { %p952_p7 = scmp.ge.s32.totalorder %s1117_s30, 1  ;;  %p264_p8 = scmp.lt.s32.totalorder %s1117_s30, 3 }
   0xc   : > { %p265_p9 = pnand %p952_p7, %p264_p8 }
   0xd   : > { %p297_p10 = scmp.lt.s32.totalorder (!%p265_p9), %s1200_s9, 1  ;;  %s1121_s22 = smov (!%p265_p9), 120  }
   0xe   : > { %268 = sbr.rel (%p265_p9) target bundleno = 1932 (0x78c), region = 52  ;;  %s1122_s23 = smov (!%p265_p9), 96  }
   0xf   : > { %s1123_s24 = smov (!%p265_p9), 80   ;;  %s1124_s25 = smov (!%p265_p9), 88  }
  0x10   : > { %s1125_s26 = smov (!%p265_p9), 104   ;;  %s1126_s10 = smov (!%p265_p9), 72  }
  0x11   : > { %s1127_s12 = smov (!%p265_p9), 64   ;;  %s1128_s13 = smov (!%p265_p9), 56  }
  0x12   : > { %s1131_s19 = smov (!%p265_p9), 8   ;;  %s1132_s20 = smov (!%p265_p9), 24  }
  0x13   : > { %s298_s17 = scalar_select %p297_p10, %s1200_s9, 1  ;;  %vm303_vm0 = vcmask 261120   ;;  %v1119_v2 = vmov 32.0   ;;  %v340_v14 = vld [vmem:[%s1446_s4 + $0x18] sm:$0xff]  ;;  %v339_v15 = vld [vmem:[%s1446_s4 + $0x10] sm:$0xff]  ;;  %v338_v16 = vld [vmem:[%s1446_s4 + $0x8] sm:$0xff] }
  0x14   : > { %1031 = vrcp.f32 %v1119_v2  ;;  %360 = vmatpush.msra.mxu2 %v340_v14  ;;  %v337_v17 = vld [vmem:[%s1446_s4] sm:$0xff]  ;;  %vm371_vm5 = vcmask 64512  }
  0x15   : > { %s954_s18 = sshll.u32 %s298_s17, 3  ;;  %v1257_v26 = vld [vmem:[%s1443_s1] sm:$0x3f]  ;;  %s1129_s17 = smov 40  }
  0x16   : > { %s300_s21 = scalar_lea.vmem %s1442_s0, %s954_s18  ;;  %361 = vmatpush.msra.mxu2 %v339_v15  ;;  %v333_v28 = vperm.slane %v1257_v26, 0  ;;  %v335_v31 = vperm.slane %v1257_v26, 1  ;;  %v1029_v34 = vld [vmem:[%s1444_s2] ss:$0 sm:$0xff]  ;;  %s1130_s18 = smov 48  }
  0x17   : > { %v1232_v0 = vld [vmem:[%s300_s21] sm:$0xff]  ;;  %s1120_s21 = smov 112  }
  0x18   : > { %v304_v1 = vsel %vm303_vm0, %v1232_v0, 0.0  ;;  %362 = vmatpush.msra.mxu2 %v338_v16 }
  0x19   : > { %305 = vadd.xlane.f32.xlu0 %v304_v1 }
  0x1a   : > { %v1032_v3 = vpop.eup %1031  ;;  %363 = vmatpush.msra.mxu2 %v337_v17 }
  0x1b   : > { %v308_v4 = vmul.f32 32.0, %v1032_v3  ;;  %vm312_vm1 = vweird.f32 %v1032_v3 }
  0x1d   : > { %v309_v5 = vsub.f32 1.0, %v308_v4 }
  0x1f   : > { %v310_v6 = vmul.f32 %v1032_v3, %v309_v5 }
  0x21   : > { %v311_v7 = vadd.f32 %v1032_v3, %v310_v6 }
  0x23   : > { %v1236_v8 = vsel %vm312_vm1, %v1032_v3, %v311_v7 }
  0x8c   : > { %v306_v9 = vpop.xlane.xlu0 %305 }
  0x8d   : > { %v314_v10 = vmul.f32 %v1236_v8, %v306_v9 }
  0x8f   : > { %v315_v11 = vsub.f32 %v1232_v0, %v314_v10 }
  0x91   : > { %v316_v12 = vmul.f32 %v315_v11, %v315_v11 }
  0x93   : > { %v317_v13 = vsel %vm303_vm0, %v316_v12, 0.0 }
  0x94   : > { %318 = vadd.xlane.f32.xlu0 %v317_v13 }
 0x107   : > { %v319_v18 = vpop.xlane.xlu0 %318 }
 0x108   : > { %v320_v19 = vmul.f32 %v319_v18, %v1236_v8 }
 0x10a   : > { %v321_v20 = vadd.f32 1e-05, %v320_v19 }
 0x10c   : > { %1033 = vrsqrt.f32 %v321_v20  ;;  %vm328_vm3 = vweird.f32 %v321_v20 }
 0x112   : > { %v1034_v21 = vpop.eup %1033 }
 0x113   : > { %v323_v22 = vmul.f32 %v1034_v21, %v321_v20  ;;  %vm329_vm2 = vweird.f32 %v1034_v21 }
 0x114   : > { %vm330_vm4 = vmor %vm328_vm3, %vm329_vm2 }
 0x115   : > { %v324_v23 = vmul.f32 %v1034_v21, %v323_v22 }
 0x117   : > { %v325_v24 = vmul.f32 0.5, %v324_v23 }
 0x119   : > { %v326_v25 = vsub.f32 1.5, %v325_v24 }
 0x11b   : > { %v327_v27 = vmul.f32 %v1034_v21, %v326_v25 }
 0x11d   : > { %v331_v29 = vsel %vm330_vm4, %v1034_v21, %v327_v27 }
 0x11e   : > { %v332_v30 = vmul.f32 %v331_v29, %v315_v11 }
 0x120   : > { %v334_v32 = vmul.f32 %v333_v28, %v332_v30 }
 0x122   : > { %v336_v33 = vadd.f32 %v335_v31, %v334_v32 }
 0x124   : > { %955 = vmatmul.msk.f32.vlgmr.msra.gmra.mxu2 %vm303_vm0, %v336_v33 }
 0x1a7   : > { %v365_v35 = vpop.f32.mrf.mxu2 }
 0x1a8   : > { %v1265_v36 = vadd.f32 %v1029_v34, %v365_v35 }
 0x1aa   : > { %533 = vrot.lane.b32.xlu0 %v1265_v36, %s1120_s21  ;;  %448 = vrot.lane.b32.xlu2 %v1265_v36, %s1121_s22  ;;  %s1133_s21 = smov 16   ;;  %s972_s22 = sshll.u32 %s1200_s9, 3 }
 0x1ab   : > { %369 = vrot.lane.b32.xlu1 %v1265_v36, %s1122_s23 }
 0x1b2   : > { %535 = vrot.lane.b32.xlu2 %v1265_v36, %s1123_s24 }
 0x1b3   : > { %450 = vrot.lane.b32.xlu1 %v1265_v36, %s1124_s25  ;;  %s885_s25 = scalar_lea.hbm %s1450_s8, %s972_s22 }
 0x1ba   : > { %618 = vrot.lane.b32.xlu2 %v1265_v36, %s1125_s26 }
 0x1bb   : > { %620 = vrot.lane.b32.xlu1 %v1265_v36, %s1126_s10 }
 0x204   : > { %v449_v37 = vpop.permute.xlu2 %448 }
 0x20c   : > { %v536_v39 = vpop.permute.xlu2 %535 }
 0x214   : > { %v619_v43 = vpop.permute.xlu2 %618 }
 0x21c   : > { %v534_v41 = vpop.permute.xlu0 %533 }
 0x21d   : > { %v370_v38 = vpop.permute.xlu1 %369 }
 0x21e   : > { %956 = vmatpush.xpose.msk.msra.mxu1 %vm371_vm5, %v370_v38 }
 0x221   : > { %957 = vmatmul.msk.f32.vlgmr.msra.gmra.mxu1 %vm371_vm5, %v1265_v36 }
 0x222   : > { %962 = vmatpush.xpose.msk.msrb.mxu1 %vm371_vm5, %v536_v39 }
 0x225   : > { %v451_v40 = vpop.permute.xlu1 %450 }
 0x226   : > { %959 = vmatpush.xpose.msk.msra.mxu3 %vm371_vm5, %v451_v40 }
 0x229   : > { %960 = vmatmul.msk.f32.vlgmr.msra.gmra.mxu3 %vm371_vm5, %v449_v37  ;;  %963 = vmatmul.msk.f32.vlgmr.msrb.gmra.mxu1 %vm371_vm5, %v534_v41 }
 0x22d   : > { %v621_v42 = vpop.permute.xlu1 %620 }
 0x22e   : > { %965 = vmatpush.xpose.msk.msra.mxu1 %vm371_vm5, %v621_v42 }
 0x231   : > { %966 = vmatmul.msk.f32.vlgmr.msra.gmra.mxu1 %vm371_vm5, %v619_v43 }
 0x29e   : > { %v393_v44 = vpop.f32.mrf.mxu1 }
 0x29f   : > { %v396_v45 = vmul.f32 0.35355338, %v393_v44 }
 0x2a1   : > { %v397_v46 = vsel %vm371_vm5, %v396_v45, -inf }
 0x2a2   : > { %398 = vmax.xlane.f32.xlu1 %v397_v46 }
 0x2a6   : > { %v558_v47 = vpop.f32.mrf.mxu1 }
 0x2a7   : > { %v561_v48 = vmul.f32 0.35355338, %v558_v47 }
 0x2a9   : > { %v562_v49 = vsel %vm371_vm5, %v561_v48, -inf }
 0x2aa   : > { %563 = vmax.xlane.f32.xlu0 %v562_v49 }
 0x2ac   : > { %v473_v50 = vpop.f32.mrf.mxu3 }
 0x2ad   : > { %v476_v51 = vmul.f32 0.35355338, %v473_v50 }
 0x2ae   : > { %v643_v53 = vpop.f32.mrf.mxu1 }
 0x2af   : > { %v477_v52 = vsel %vm371_vm5, %v476_v51, -inf  ;;  %v646_v54 = vmul.f32 0.35355338, %v643_v53 }
 0x2b0   : > { %478 = vmax.xlane.f32.xlu2 %v477_v52 }
 0x2b1   : > { %v647_v55 = vsel %vm371_vm5, %v646_v54, -inf }
 0x2b8   : > { %648 = vmax.xlane.f32.xlu2 %v647_v55 }
 0x2d0   : > { %421 = vrot.lane.b32.xlu2 %v1265_v36, %s1127_s12  ;;  %s889_s12 = sshll.u32 %s885_s25, 4  ;;  %s890_s12 = int_to_ptr.hbm [resolvable:$true] %s889_s12 }
 0x2d1   : > { %s1069_s9 = sshra.s32 %s890_s12, 4  ;;  %s1070_s9 = int_to_ptr.hbm [resolvable:$true] %s1069_s9 }
 0x2d2   : > { %p1076_p0 = scmp.lt.s32.totalorder %s1070_s9, %s1450_s8 }
 0x315   : > { %v399_v56 = vpop.xlane.xlu1 %398 }
 0x316   : > { %v400_v57 = vsub.f32 %v396_v45, %v399_v56 }
 0x318   : > { %v401_v58 = vmul.f32 1.442695, %v400_v57 }
 0x31a   : > { %1035 = vpow2.f32 %v401_v58 }
 0x31d   : > { %v564_v59 = vpop.xlane.xlu0 %563 }
 0x31e   : > { %v565_v60 = vsub.f32 %v561_v48, %v564_v59 }
 0x320   : > { %v1036_v61 = vpop.eup %1035  ;;  %v566_v62 = vmul.f32 1.442695, %v565_v60 }
 0x321   : > { %v403_v63 = vsel %vm371_vm5, %v1036_v61, 0.0 }
 0x322   : > { %1037 = vpow2.f32 %v566_v62  ;;  %404 = vadd.xlane.f32.xlu1 %v403_v63 }
 0x323   : > { %v479_v1 = vpop.xlane.xlu2 %478 }
 0x324   : > { %v480_v2 = vsub.f32 %v476_v51, %v479_v1 }
 0x326   : > { %v481_v3 = vmul.f32 1.442695, %v480_v2 }
 0x328   : > { %v1289_v4 = vpop.eup %1037  ;;  %1039 = vpow2.f32 %v481_v3 }
 0x329   : > { %v568_v5 = vsel %vm371_vm5, %v1289_v4, 0.0 }
 0x32a   : > { %569 = vadd.xlane.f32.xlu1 %v568_v5 }
 0x32b   : > { %v649_v6 = vpop.xlane.xlu2 %648 }
 0x32c   : > { %v650_v7 = vsub.f32 %v646_v54, %v649_v6 }
 0x32e   : > { %v1293_v9 = vpop.eup %1039  ;;  %v651_v10 = vmul.f32 1.442695, %v650_v7 }
 0x32f   : > { %v483_v11 = vsel %vm371_vm5, %v1293_v9, 0.0 }
 0x330   : > { %1041 = vpow2.f32 %v651_v10  ;;  %484 = vadd.xlane.f32.xlu2 %v483_v11  ;;  %v706_v11 = vld [vmem:[%s1447_s5 + $0x10] sm:$0xff] }
 0x333   : > { %v422_v12 = vpop.permute.xlu2 %421 }
 0x334   : > { %442 = vmatpush.msrb.mxu2 %v422_v12  ;;  %v705_v12 = vld [vmem:[%s1447_s5 + $0x8] sm:$0xff] }
 0x336   : > { %v1297_v13 = vpop.eup %1041 }
 0x337   : > { %v653_v14 = vsel %vm371_vm5, %v1297_v13, 0.0 }
 0x338   : > { %654 = vadd.xlane.f32.xlu0 %v653_v14 }
 0x343   : > { %501 = vrot.lane.b32.xlu1 %v1265_v36, %s1128_s13 }
 0x348   : > { %671 = vrot.lane.b32.xlu2 %v1265_v36, %s1129_s17  ;;  %s1071_s17 = scalar_lea.hbm %s1070_s9, 8 }
 0x349   : > { %p1072_p11 = scmp.ne.s32.totalorder %s1070_s9, %s1071_s17 }
 0x34b   : > { %p1073_p12 = pnand %p1072_p11, %p1217_p5 }
 0x34c   : > { %586 = vrot.lane.b32.xlu0 %v1265_v36, %s1130_s18 }
 0x34d   : > { %p1074_p13 = pneg %p1073_p12 }
 0x395   : > { %v405_v15 = vpop.xlane.xlu1 %404 }
 0x396   : > { %1043 = vrcp.f32 %v405_v15  ;;  %v417_v20 = vand.u32 2147483648, %v405_v15  ;;  %v415_v22 = vand.u32 2147483647, %v405_v15  ;;  %vm411_vm7 = vweird.f32 %v405_v15 }
 0x398   : > { %v418_v25 = vor.u32 1.1754944e-38, %v417_v20  ;;  %vm416_vm9 = vcmp.eq.f32.partialorder %v415_v22, 8.507059e+37 }
 0x39c   : > { %v1044_v16 = vpop.eup %1043 }
 0x39d   : > { %v407_v17 = vmul.f32 %v1044_v16, %v405_v15  ;;  %v570_v18 = vpop.xlane.xlu1 %569  ;;  %vm412_vm6 = vweird.f32 %v1044_v16 }
 0x39e   : > { %1045 = vrcp.f32 %v570_v18  ;;  %vm413_vm8 = vmor %vm411_vm7, %vm412_vm6  ;;  %v582_v48 = vand.u32 2147483648, %v570_v18  ;;  %vm576_vm15 = vweird.f32 %v570_v18  ;;  %v580_v52 = vand.u32 2147483647, %v570_v18 }
 0x39f   : > { %v408_v19 = vsub.f32 1.0, %v407_v17 }
 0x3a0   : > { %v583_v59 = vor.u32 1.1754944e-38, %v582_v48  ;;  %vm581_vm4 = vcmp.eq.f32.partialorder %v580_v52, 8.507059e+37  ;;  %v847_v48 = vld [vmem:[%s1449_s7 + $0x68] sm:$0xff]  ;;  %v844_v52 = vld [vmem:[%s1449_s7 + $0x50] sm:$0xff] }
 0x3a1   : > { %v409_v21 = vmul.f32 %v1044_v16, %v408_v19 }
 0x3a3   : > { %v410_v23 = vadd.f32 %v1044_v16, %v409_v21  ;;  %v485_v24 = vpop.xlane.xlu2 %484 }
 0x3a4   : > { %1047 = vrcp.f32 %v485_v24  ;;  %v1046_v27 = vpop.eup %1045  ;;  %v497_v37 = vand.u32 2147483648, %v485_v24  ;;  %v495_v39 = vand.u32 2147483647, %v485_v24  ;;  %vm491_vm11 = vweird.f32 %v485_v24 }
 0x3a5   : > { %v414_v28 = vsel %vm413_vm8, %v1044_v16, %v410_v23  ;;  %v572_v31 = vmul.f32 %v1046_v27, %v570_v18  ;;  %vm577_vm14 = vweird.f32 %v1046_v27  ;;  %vm616_vm8 = vcmask 195712  }
 0x3a6   : > { %v419_v29 = vsel %vm416_vm9, %v418_v25, %v414_v28  ;;  %v498_v43 = vor.u32 1.1754944e-38, %v497_v37  ;;  %vm496_vm13 = vcmp.eq.f32.partialorder %v495_v39, 8.507059e+37  ;;  %vm1306_vm1 = vmor %vm576_vm15, %vm577_vm14  ;;  %vm701_vm9 = vcmask 261312  }
 0x3a7   : > { %v420_v30 = vmul.f32 %v1036_v61, %v419_v29  ;;  %v573_v35 = vsub.f32 1.0, %v572_v31  ;;  %v708_v18 = vperm.slane %v1257_v26, 2  ;;  %v762_v29 = vld [vmem:[%s1448_s6 + $0x18] sm:$0xff]  ;;  %v759_v31 = vld [vmem:[%s1448_s6] sm:$0xff] }
 0x3a9   : > { %958 = vmatmul.msk.f32.vlgmr.msrb.gmra.mxu2 %vm371_vm5, %v420_v30  ;;  %v574_v40 = vmul.f32 %v1046_v27, %v573_v35  ;;  %v760_v30 = vld [vmem:[%s1448_s6 + $0x8] sm:$0xff] }
 0x3aa   : > { %v1048_v32 = vpop.eup %1047 }
 0x3ab   : > { %v487_v33 = vmul.f32 %v1048_v32, %v485_v24  ;;  %v655_v34 = vpop.xlane.xlu0 %654  ;;  %vm492_vm10 = vweird.f32 %v1048_v32  ;;  %v575_v46 = vadd.f32 %v1046_v27, %v574_v40  ;;  %v672_v57 = vpop.permute.xlu2 %671 }
 0x3ac   : > { %1049 = vrcp.f32 %v655_v34  ;;  %vm493_vm12 = vmor %vm491_vm11, %vm492_vm10  ;;  %v667_v53 = vand.u32 2147483648, %v655_v34  ;;  %v665_v56 = vand.u32 2147483647, %v655_v34  ;;  %vm661_vm3 = vweird.f32 %v655_v34 }
 0x3ad   : > { %v488_v36 = vsub.f32 1.0, %v487_v33  ;;  %v579_v58 = vsel %vm1306_vm1, %v1046_v27, %v575_v46 }
 0x3ae   : > { %v668_v61 = vor.u32 1.1754944e-38, %v667_v53  ;;  %vm666_vm7 = vcmp.eq.f32.partialorder %v665_v56, 8.507059e+37  ;;  %v584_v63 = vsel %vm581_vm4, %v583_v59, %v579_v58  ;;  %v841_v59 = vld [vmem:[%s1449_s7 + $0x38] sm:$0xff] }
 0x3af   : > { %v489_v38 = vmul.f32 %v1048_v32, %v488_v36  ;;  %v585_v5 = vmul.f32 %v1289_v4, %v584_v63  ;;  %v707_v4 = vld [vmem:[%s1447_s5 + $0x18] sm:$0xff]  ;;  %v839_v63 = vld [vmem:[%s1449_s7 + $0x28] sm:$0xff] }
 0x3b0   : > { %724 = vmatpush.msrb.mxu1 %v707_v4 }
 0x3b1   : > { %v490_v41 = vadd.f32 %v1048_v32, %v489_v38 }
 0x3b2   : > { %v1050_v42 = vpop.eup %1049  ;;  %725 = vmatpush.msrb.mxu1 %v706_v11 }
 0x3b3   : > { %v494_v44 = vsel %vm493_vm12, %v1048_v32, %v490_v41  ;;  %v657_v45 = vmul.f32 %v1050_v42, %v655_v34  ;;  %vm662_vm2 = vweird.f32 %v1050_v42  ;;  %v755_v41 = vperm.slane %v1257_v26, 3 }
 0x3b4   : > { %v499_v47 = vsel %vm496_vm13, %v498_v43, %v494_v44  ;;  %vm663_vm6 = vmor %vm661_vm3, %vm662_vm2  ;;  %726 = vmatpush.msrb.mxu1 %v705_v12  ;;  %v757_v44 = vperm.slane %v1257_v26, 4  ;;  %v835_v12 = vld [vmem:[%s1449_s7 + $0x8] sm:$0xff] }
 0x3b5   : > { %v658_v49 = vsub.f32 1.0, %v657_v45  ;;  %v502_v50 = vpop.permute.xlu1 %501  ;;  %v500_v51 = vmul.f32 %v1293_v9, %v499_v47  ;;  %v848_v47 = vld [vmem:[%s1449_s7 + $0x70] sm:$0xff] }
 0x3b6   : > { %522 = vmatpush.msra.mxu2 %v502_v50  ;;  %v846_v50 = vld [vmem:[%s1449_s7 + $0x60] sm:$0xff] }
 0x3b7   : > { %v659_v55 = vmul.f32 %v1050_v42, %v658_v49  ;;  %961 = vmatmul.msk.f32.vlgmr.msra.gmra.mxu2 %vm371_vm5, %v500_v51  ;;  %v1030_v49 = vld [vmem:[%s1445_s3] ss:$0 sm:$0xff]  ;;  %v845_v51 = vld [vmem:[%s1449_s7 + $0x58] sm:$0xff] }
 0x3b8   : > { %692 = vmatpush.msrb.mxu2 %v672_v57  ;;  %v842_v57 = vld [vmem:[%s1449_s7 + $0x40] sm:$0xff] }
 0x3b9   : > { %v660_v60 = vadd.f32 %v1050_v42, %v659_v55  ;;  %v843_v55 = vld [vmem:[%s1449_s7 + $0x48] sm:$0xff] }
 0x3bb   : > { %v664_v62 = vsel %vm663_vm6, %v1050_v42, %v660_v60 }
 0x3bc   : > { %v669_v1 = vsel %vm666_vm7, %v668_v61, %v664_v62  ;;  %v840_v61 = vld [vmem:[%s1449_s7 + $0x30] sm:$0xff] }
 0x3bd   : > { %v670_v2 = vmul.f32 %v1297_v13, %v669_v1  ;;  %v704_v13 = vld [vmem:[%s1447_s5] sm:$0xff] }
 0x3be   : > { %v587_v3 = vpop.permute.xlu0 %586  ;;  %727 = vmatpush.msrb.mxu1 %v704_v13 }
 0x3bf   : > { %607 = vmatpush.msrb.mxu3 %v587_v3  ;;  %967 = vmatmul.msk.f32.vlgmr.msrb.gmra.mxu2 %vm371_vm5, %v670_v2  ;;  %v838_v3 = vld [vmem:[%s1449_s7 + $0x20] sm:$0xff] }
 0x3c0   : > { %964 = vmatmul.msk.f32.vlgmr.msrb.gmra.mxu3 %vm371_vm5, %v585_v5 }
 0x3c1   : > { %782 = vmatpush.msra.mxu3 %v762_v29 }
 0x42c   : > { %v444_v6 = vpop.f32.mrf.mxu2 }
 0x42d   : > { %447 = vst.msk [vmem:[#allocation2] sm:$0xff] %vm371_vm5, %v444_v6  ;;  %vm531_vm5 = vcmask 130112  }
 0x43a   : > { %v524_v7 = vpop.f32.mrf.mxu2 }
 0x43b   : > { %528 = vrot.lane.b32.xlu0 %v524_v7, %s1131_s19  ;;  %v837_v7 = vld [vmem:[%s1449_s7 + $0x18] sm:$0xff] }
 0x442   : > { %v694_v9 = vpop.f32.mrf.mxu2 }
 0x443   : > { %v609_v10 = vpop.f32.mrf.mxu3  ;;  %698 = vrot.lane.b32.xlu2 %v694_v9, %s1132_s20  ;;  %s294_s20 = sand.u32 1, %s1109_s28  }
 0x444   : > { %613 = vrot.lane.b32.xlu1 %v609_v10, %s1133_s21  ;;  %v836_v10 = vld [vmem:[%s1449_s7 + $0x10] sm:$0xff]  ;;  %s953_s21 = sshll.u32 %s294_s20, 3  ;;  %s875_s13 = scalar_lea.sflag [#allocation4], %s294_s20 }
 0x445   : > { %s296_s26 = scalar_lea.vmem [#allocation3], %s953_s21  ;;  %s1075_s21 = scalar_lea.hbm %s1450_s8, 16 }
 0x446   : > { %s887_s10 = sshll.u32 %s296_s26, 4  ;;  %p1077_p1 = scmp.lt.s32.totalorder %s1075_s21, %s1071_s17  ;;  %s888_s10 = int_to_ptr.vmem [resolvable:$true] %s887_s10 }
 0x448   : > { %p1078_p2 = por %p1077_p1, %p1076_p0 }
 0x44a   : > { %p1079_p3 = pnand %p1078_p2, %p1074_p13 }
 0x49d   : > { %v699_v16 = vpop.permute.xlu2 %698 }
 0x4ad   : > { %v529_v14 = vpop.permute.xlu0 %528 }
 0x4ae   : > { %532 = vst.msk [vmem:[#allocation2] sm:$0xff] %vm531_vm5, %v529_v14  ;;  %v834_v14 = vld [vmem:[%s1449_s7] sm:$0xff] }
 0x4b6   : > { %v614_v15 = vpop.permute.xlu1 %613 }
 0x4b7   : > { %617 = vst.msk [vmem:[#allocation2] sm:$0xff] %vm616_vm8, %v614_v15 }
 0x4b8   : > { %702 = vst.msk [vmem:[#allocation2] sm:$0xff] %vm701_vm9, %v699_v16 }
 0x4bf   : > { %v703_v17 = vld [vmem:[#allocation2] sm:$0xff] }
 0x4c0   : > { %968 = vmatmul.msk.f32.vlgmr.msrb.gmra.mxu1 %vm303_vm0, %v703_v17 }
 0x53d   : > { %v729_v19 = vpop.f32.mrf.mxu1 }
 0x53e   : > { %v730_v20 = vadd.f32 %v729_v19, %v708_v18 }
 0x540   : > { %v1333_v21 = vadd.f32 %v730_v20, %v1232_v0  ;;  %v761_v0 = vld [vmem:[%s1448_s6 + $0x10] sm:$0xff] }
 0x541   : > { %783 = vmatpush.msra.mxu3 %v761_v0 }
 0x542   : > { %v733_v22 = vsel %vm303_vm0, %v1333_v21, 0.0 }
 0x543   : > { %734 = vadd.xlane.f32.xlu0 %v733_v22  ;;  %784 = vmatpush.msra.mxu3 %v760_v30 }
 0x545   : > { %785 = vmatpush.msra.mxu3 %v759_v31 }
 0x5b6   : > { %v735_v23 = vpop.xlane.xlu0 %734 }
 0x5b7   : > { %v736_v24 = vmul.f32 %v735_v23, %v1236_v8 }
 0x5b9   : > { %v737_v25 = vsub.f32 %v1333_v21, %v736_v24 }
 0x5bb   : > { %v738_v27 = vmul.f32 %v737_v25, %v737_v25 }
 0x5bd   : > { %v739_v28 = vsel %vm303_vm0, %v738_v27, 0.0 }
 0x5be   : > { %740 = vadd.xlane.f32.xlu1 %v739_v28 }
 0x631   : > { %v741_v32 = vpop.xlane.xlu1 %740 }
 0x632   : > { %v742_v33 = vmul.f32 %v741_v32, %v1236_v8  ;;  %v849_v8 = vld [vmem:[%s1449_s7 + $0x78] sm:$0xff] }
 0x633   : > { %850 = vmatpush.msra.mxu0 %v849_v8 }
 0x634   : > { %v743_v34 = vadd.f32 1e-05, %v742_v33 }
 0x635   : > { %851 = vmatpush.msra.mxu0 %v848_v47 }
 0x636   : > { %1051 = vrsqrt.f32 %v743_v34  ;;  %vm750_vm11 = vweird.f32 %v743_v34 }
 0x637   : > { %852 = vmatpush.msra.mxu0 %v847_v48 }
 0x639   : > { %853 = vmatpush.msra.mxu0 %v846_v50 }
 0x63b   : > { %854 = vmatpush.msra.mxu0 %v845_v51 }
 0x63c   : > { %v1052_v35 = vpop.eup %1051 }
 0x63d   : > { %v745_v36 = vmul.f32 %v1052_v35, %v743_v34  ;;  %vm751_vm10 = vweird.f32 %v1052_v35  ;;  %855 = vmatpush.msra.mxu0 %v844_v52 }
 0x63e   : > { %vm752_vm12 = vmor %vm750_vm11, %vm751_vm10 }
 0x63f   : > { %v746_v37 = vmul.f32 %v1052_v35, %v745_v36  ;;  %856 = vmatpush.msra.mxu0 %v843_v55 }
 0x641   : > { %v747_v38 = vmul.f32 0.5, %v746_v37  ;;  %857 = vmatpush.msra.mxu0 %v842_v57 }
 0x643   : > { %v748_v39 = vsub.f32 1.5, %v747_v38  ;;  %858 = vmatpush.msra.mxu0 %v841_v59 }
 0x645   : > { %v749_v40 = vmul.f32 %v1052_v35, %v748_v39  ;;  %859 = vmatpush.msra.mxu0 %v840_v61 }
 0x647   : > { %v753_v42 = vsel %vm752_vm12, %v1052_v35, %v749_v40  ;;  %860 = vmatpush.msra.mxu0 %v839_v63 }
 0x648   : > { %v754_v43 = vmul.f32 %v753_v42, %v737_v25 }
 0x649   : > { %861 = vmatpush.msra.mxu0 %v838_v3 }
 0x64a   : > { %v756_v45 = vmul.f32 %v755_v41, %v754_v43  ;;  %v871_v43 = vperm.slane %v1257_v26, 5 }
 0x64b   : > { %862 = vmatpush.msra.mxu0 %v837_v7 }
 0x64c   : > { %v758_v46 = vadd.f32 %v757_v44, %v756_v45 }
 0x64d   : > { %863 = vmatpush.msra.mxu0 %v836_v10 }
 0x64e   : > { %969 = vmatmul.msk.f32.vlgmr.msra.gmra.mxu3 %vm303_vm0, %v758_v46 }
 0x64f   : > { %864 = vmatpush.msra.mxu0 %v835_v12 }
 0x651   : > { %865 = vmatpush.msra.mxu0 %v834_v14 }
 0x6d1   : > { %v787_v53 = vpop.f32.mrf.mxu3 }
 0x6d2   : > { %v788_v54 = vadd.f32 %v1030_v49, %v787_v53 }
 0x6d4   : > { %v791_v56 = vmul.f32 0.70710677, %v788_v54  ;;  %v790_v40 = vmul.f32 0.5, %v788_v54 }
 0x6d6   : > { %v792_v58 = vmul.f32 %v791_v56, %v791_v56 }
 0x6d8   : > { %v793_v60 = vmin.f32 %v792_v58, 16.0 }
 0x6da   : > { %v794_v62 = vmul.f32 2.1237322e-06, %v793_v60  ;;  %v805_v1 = vmul.f32 3.8918573e-05, %v793_v60 }
 0x6dc   : > { %v795_v2 = vadd.f32 0.00028619796, %v794_v62  ;;  %v806_v5 = vadd.f32 0.001143296, %v805_v1 }
 0x6de   : > { %v796_v6 = vmul.f32 %v795_v2, %v793_v60  ;;  %v807_v9 = vmul.f32 %v806_v5, %v793_v60 }
 0x6e0   : > { %v808_v4 = vadd.f32 0.014752088, %v807_v9  ;;  %v797_v11 = vadd.f32 0.0036580483, %v796_v6 }
 0x6e2   : > { %v809_v13 = vmul.f32 %v808_v4, %v793_v60  ;;  %v798_v16 = vmul.f32 %v797_v11, %v793_v60 }
 0x6e4   : > { %v810_v15 = vadd.f32 0.112945676, %v809_v13  ;;  %v799_v19 = vadd.f32 0.05243302, %v798_v16 }
 0x6e6   : > { %v811_v17 = vmul.f32 %v810_v15, %v793_v60  ;;  %v800_v23 = vmul.f32 %v799_v19, %v793_v60 }
 0x6e8   : > { %v812_v18 = vadd.f32 0.4994258, %v811_v17  ;;  %v801_v24 = vadd.f32 0.18741608, %v800_v23 }
 0x6ea   : > { %v813_v20 = vmul.f32 %v812_v18, %v793_v60  ;;  %v802_v27 = vmul.f32 %v801_v24, %v793_v60 }
 0x6ec   : > { %v814_v22 = vadd.f32 1.0, %v813_v20  ;;  %v803_v30 = vadd.f32 1.1283791, %v802_v27 }
 0x6ee   : > { %1053 = vrcp.f32 %v814_v22  ;;  %v826_v0 = vand.u32 2147483648, %v814_v22  ;;  %v824_v32 = vand.u32 2147483647, %v814_v22  ;;  %vm820_vm14 = vweird.f32 %v814_v22 }
 0x6ef   : > { %v804_v35 = vmul.f32 %v803_v30, %v791_v56 }
 0x6f0   : > { %v827_v34 = vor.u32 1.1754944e-38, %v826_v0  ;;  %vm825_vm1 = vcmp.eq.f32.partialorder %v824_v32, 8.507059e+37 }
 0x6f4   : > { %v1054_v25 = vpop.eup %1053 }
 0x6f5   : > { %v816_v28 = vmul.f32 %v1054_v25, %v814_v22  ;;  %vm821_vm13 = vweird.f32 %v1054_v25 }
 0x6f6   : > { %vm822_vm15 = vmor %vm820_vm14, %vm821_vm13 }
 0x6f7   : > { %v817_v29 = vsub.f32 1.0, %v816_v28 }
 0x6f9   : > { %v818_v31 = vmul.f32 %v1054_v25, %v817_v29 }
 0x6fb   : > { %v819_v33 = vadd.f32 %v1054_v25, %v818_v31 }
 0x6fd   : > { %v823_v36 = vsel %vm822_vm15, %v1054_v25, %v819_v33 }
 0x6fe   : > { %v828_v37 = vsel %vm825_vm1, %v827_v34, %v823_v36 }
 0x6ff   : > { %v829_v38 = vmul.f32 %v828_v37, %v804_v35 }
 0x701   : > { %v970_v39 = vclamps-f32 %v829_v38, 1.0 }
 0x703   : > { %v832_v41 = vadd.f32 1.0, %v970_v39 }
 0x705   : > { %v833_v42 = vmul.f32 %v832_v41, %v790_v40 }
 0x707   : > { %866 = vmatmul.f32.vlgmr.msra.gmra.mxu0 %v833_v42 }
 0x784   : > { %v867_v44 = vpop.f32.mrf.mxu0 }
 0x785   : > { %v870_v45 = vadd.f32 %v867_v44, %v1333_v21 }
 0x787   : > { %v872_v46 = vadd.f32 %v871_v43, %v870_v45 }
 0x789   : > { %873 = vst.msk [vmem:[%s296_s26] sm:$0xff] %vm303_vm0, %v872_v46 }
 0x78a   : > { %1082 = shalt.err (!%p1079_p3)
}
 0x78b   : > { %975 = dma.vmem_to_hbm [thread:$0]  (%p1217_p5), %s888_s10, 128, %s890_s12, %s875_s13  }
 0x78c PF: > { %p981_p4 = scmp.ge.s32.totalorder %s1117_s30, 2  ;;  %s901_s20 = sand.u32 1, %s1105_s27  }
 0x78d   : > { %s902_s24 = scalar_lea.sflag [#allocation4], %s901_s20 }
 0x78e   : > { %p978_p7 = pnand %p981_p4, %p1221_p6 }
 0x790   : > { %p979_p8 = pneg %p978_p7 }
 0x792   : > { %1100 = dma.done.wait (%p979_p8), %s902_s24, 128  }
 0x793   : > { %1102 = vsyncadd (%p979_p8), %s902_s24, 4294967168  ;;  %p18_p9 = scmp.ge.s32.totalorder %s1204_s11, 4   ;;  %s1455_s27 = smov %s1109_s28 }
 0x794   : > { %s1456_s28 = smov %s1113_s29  ;;  %s1457_s29 = smov %s1215_s14 }
 0x795   : > { %s1458_s30 = smov %s1204_s11  ;;  %20 = sbr.rel (!%p18_p9) target bundleno = 3 (0x3), region = 87 }
 0x79a   :  { %908 = vsyncpa [#allocation4], 1 }
 0x79b   :  { %910 = vsyncpa [#allocation4 + $0x1], 1 }

// kernel: tpu_custom_call.1
= control target key start
LH: loop header
LB: loop body
LE: loop exit
PB: predicated region body
PF: predicated region fallthrough
CT: control target
= control target key end

     0   :  { %13 = vsyncpa [#allocation4], 0  ;;  %s1442_s0 = inlined_call_operand.vmem [shape: f32[16,32], index: 0, kind: input, shape index: {}]   ;;  %s1443_s1 = inlined_call_operand.vmem [shape: f32[6,32], index: 1, kind: input, shape index: {}]   ;;  %s1444_s2 = inlined_call_operand.vmem [shape: f32[1,96], index: 2, kind: input, shape index: {}]   ;;  %s1445_s3 = inlined_call_operand.vmem [shape: f32[1,128], index: 3, kind: input, shape index: {}]   ;;  %s1446_s4 = inlined_call_operand.vmem [shape: f32[32,96], index: 4, kind: input, shape index: {}]   ;;  %s1447_s5 = inlined_call_operand.vmem [shape: f32[32,32], index: 5, kind: input, shape index: {}]   ;;  %s1448_s6 = inlined_call_operand.vmem [shape: f32[32,128], index: 6, kind: input, shape index: {}]   ;;  %s1449_s7 = inlined_call_operand.vmem [shape: f32[128,32], index: 7, kind: input, shape index: {}]   ;;  %s1450_s8 = inlined_call_operand.hbm [shape: f32[16,32], index: 8, kind: output, shape index: {}]  }
   0x1   :  { %15 = vsyncpa [#allocation4 + $0x1], 0  ;;  %s1179_s27 = smov 0   ;;  %s1181_s28 = smov 0  }
   0x2   :  { %s1183_s29 = smov 0   ;;  %s1185_s30 = smov 0  }
   0x3 LB: > { %s1200_s9 = sadd.s32 4294967295, %s1117_s30   ;;  %s949_s10 = sadd.s32 4294967294, %s1117_s30   ;;  %s1117_s30 = sphi %s1185_s30, %s1458_s30   ;;  %s1113_s29 = sphi %s1183_s29, %s1457_s29   ;;  %s1109_s28 = sphi %s1181_s28, %s1456_s28   ;;  %s1105_s27 = sphi %s1179_s27, %s1455_s27  }
   0x4   : > { %s1204_s11 = sadd.s32 1, %s1117_s30   ;;  %s201_s12 = sadd.s32 1, %s1113_s29 }
   0x5   : > { %s198_s13 = ssub.s32 %s1117_s30, %s1204_s11  ;;  %p211_p0 = scmp.ne.s32.totalorder %s1113_s29, %s1109_s28 }
   0x6   : > { %p199_p1 = scmp.eq.s32.totalorder %s198_s13, 0  ;;  %p212_p2 = scmp.eq.s32.totalorder %s1200_s9, 1 }
   0x7   : > { %p217_p3 = scmp.ne.s32.totalorder %s1109_s28, %s1105_s27  ;;  %p218_p4 = scmp.eq.s32.totalorder %s949_s10, 1 }
   0x8   : > { %s1215_s14 = scalar_select %p199_p1, %s1113_s29, %s201_s12  }
   0x9   : > { %p1217_p5 = por %p212_p2, %p211_p0  ;;  %p1221_p6 = por %p218_p4, %p217_p3 }
   0xa   : > { %p952_p7 = scmp.ge.s32.totalorder %s1117_s30, 1  ;;  %p264_p8 = scmp.lt.s32.totalorder %s1117_s30, 3 }
   0xc   : > { %p265_p9 = pnand %p952_p7, %p264_p8 }
   0xd   : > { %p297_p10 = scmp.lt.s32.totalorder (!%p265_p9), %s1200_s9, 1  ;;  %s1121_s22 = smov (!%p265_p9), 120  }
   0xe   : > { %268 = sbr.rel (%p265_p9) target bundleno = 1932 (0x78c), region = 52  ;;  %s1122_s23 = smov (!%p265_p9), 96  }
   0xf   : > { %s1123_s24 = smov (!%p265_p9), 80   ;;  %s1124_s25 = smov (!%p265_p9), 88  }
  0x10   : > { %s1125_s26 = smov (!%p265_p9), 104   ;;  %s1126_s10 = smov (!%p265_p9), 72  }
  0x11   : > { %s1127_s12 = smov (!%p265_p9), 64   ;;  %s1128_s13 = smov (!%p265_p9), 56  }
  0x12   : > { %s1131_s19 = smov (!%p265_p9), 8   ;;  %s1132_s20 = smov (!%p265_p9), 24  }
  0x13   : > { %s298_s17 = scalar_select %p297_p10, %s1200_s9, 1  ;;  %vm303_vm0 = vcmask 261120   ;;  %v1119_v2 = vmov 32.0   ;;  %v340_v14 = vld [vmem:[%s1446_s4 + $0x18] sm:$0xff]  ;;  %v339_v15 = vld [vmem:[%s1446_s4 + $0x10] sm:$0xff]  ;;  %v338_v16 = vld [vmem:[%s1446_s4 + $0x8] sm:$0xff] }
  0x14   : > { %1031 = vrcp.f32 %v1119_v2  ;;  %360 = vmatpush.msra.mxu2 %v340_v14  ;;  %v337_v17 = vld [vmem:[%s1446_s4] sm:$0xff]  ;;  %vm371_vm5 = vcmask 64512  }
  0x15   : > { %s954_s18 = sshll.u32 %s298_s17, 3  ;;  %v1257_v26 = vld [vmem:[%s1443_s1] sm:$0x3f]  ;;  %s1129_s17 = smov 40  }
  0x16   : > { %s300_s21 = scalar_lea.vmem %s1442_s0, %s954_s18  ;;  %361 = vmatpush.msra.mxu2 %v339_v15  ;;  %v333_v28 = vperm.slane %v1257_v26, 0  ;;  %v335_v31 = vperm.slane %v1257_v26, 1  ;;  %v1029_v34 = vld [vmem:[%s1444_s2] ss:$0 sm:$0xff]  ;;  %s1130_s18 = smov 48  }
  0x17   : > { %v1232_v0 = vld [vmem:[%s300_s21] sm:$0xff]  ;;  %s1120_s21 = smov 112  }
  0x18   : > { %v304_v1 = vsel %vm303_vm0, %v1232_v0, 0.0  ;;  %362 = vmatpush.msra.mxu2 %v338_v16 }
  0x19   : > { %305 = vadd.xlane.f32.xlu0 %v304_v1 }
  0x1a   : > { %v1032_v3 = vpop.eup %1031  ;;  %363 = vmatpush.msra.mxu2 %v337_v17 }
  0x1b   : > { %v308_v4 = vmul.f32 32.0, %v1032_v3  ;;  %vm312_vm1 = vweird.f32 %v1032_v3 }
  0x1d   : > { %v309_v5 = vsub.f32 1.0, %v308_v4 }
  0x1f   : > { %v310_v6 = vmul.f32 %v1032_v3, %v309_v5 }
  0x21   : > { %v311_v7 = vadd.f32 %v1032_v3, %v310_v6 }
  0x23   : > { %v1236_v8 = vsel %vm312_vm1, %v1032_v3, %v311_v7 }
  0x8c   : > { %v306_v9 = vpop.xlane.xlu0 %305 }
  0x8d   : > { %v314_v10 = vmul.f32 %v1236_v8, %v306_v9 }
  0x8f   : > { %v315_v11 = vsub.f32 %v1232_v0, %v314_v10 }
  0x91   : > { %v316_v12 = vmul.f32 %v315_v11, %v315_v11 }
  0x93   : > { %v317_v13 = vsel %vm303_vm0, %v316_v12, 0.0 }
  0x94   : > { %318 = vadd.xlane.f32.xlu0 %v317_v13 }
 0x107   : > { %v319_v18 = vpop.xlane.xlu0 %318 }
 0x108   : > { %v320_v19 = vmul.f32 %v319_v18, %v1236_v8 }
 0x10a   : > { %v321_v20 = vadd.f32 1e-05, %v320_v19 }
 0x10c   : > { %1033 = vrsqrt.f32 %v321_v20  ;;  %vm328_vm3 = vweird.f32 %v321_v20 }
 0x112   : > { %v1034_v21 = vpop.eup %1033 }
 0x113   : > { %v323_v22 = vmul.f32 %v1034_v21, %v321_v20  ;;  %vm329_vm2 = vweird.f32 %v1034_v21 }
 0x114   : > { %vm330_vm4 = vmor %vm328_vm3, %vm329_vm2 }
 0x115   : > { %v324_v23 = vmul.f32 %v1034_v21, %v323_v22 }
 0x117   : > { %v325_v24 = vmul.f32 0.5, %v324_v23 }
 0x119   : > { %v326_v25 = vsub.f32 1.5, %v325_v24 }
 0x11b   : > { %v327_v27 = vmul.f32 %v1034_v21, %v326_v25 }
 0x11d   : > { %v331_v29 = vsel %vm330_vm4, %v1034_v21, %v327_v27 }
 0x11e   : > { %v332_v30 = vmul.f32 %v331_v29, %v315_v11 }
 0x120   : > { %v334_v32 = vmul.f32 %v333_v28, %v332_v30 }
 0x122   : > { %v336_v33 = vadd.f32 %v335_v31, %v334_v32 }
 0x124   : > { %955 = vmatmul.msk.f32.vlgmr.msra.gmra.mxu2 %vm303_vm0, %v336_v33 }
 0x1a7   : > { %v365_v35 = vpop.f32.mrf.mxu2 }
 0x1a8   : > { %v1265_v36 = vadd.f32 %v1029_v34, %v365_v35 }
 0x1aa   : > { %533 = vrot.lane.b32.xlu0 %v1265_v36, %s1120_s21  ;;  %448 = vrot.lane.b32.xlu2 %v1265_v36, %s1121_s22  ;;  %s1133_s21 = smov 16   ;;  %s972_s22 = sshll.u32 %s1200_s9, 3 }
 0x1ab   : > { %369 = vrot.lane.b32.xlu1 %v1265_v36, %s1122_s23 }
 0x1b2   : > { %535 = vrot.lane.b32.xlu2 %v1265_v36, %s1123_s24 }
 0x1b3   : > { %450 = vrot.lane.b32.xlu1 %v1265_v36, %s1124_s25  ;;  %s885_s25 = scalar_lea.hbm %s1450_s8, %s972_s22 }
 0x1ba   : > { %618 = vrot.lane.b32.xlu2 %v1265_v36, %s1125_s26 }
 0x1bb   : > { %620 = vrot.lane.b32.xlu1 %v1265_v36, %s1126_s10 }
 0x204   : > { %v449_v37 = vpop.permute.xlu2 %448 }
 0x20c   : > { %v536_v39 = vpop.permute.xlu2 %535 }
 0x214   : > { %v619_v43 = vpop.permute.xlu2 %618 }
 0x21c   : > { %v534_v41 = vpop.permute.xlu0 %533 }
 0x21d   : > { %v370_v38 = vpop.permute.xlu1 %369 }
 0x21e   : > { %956 = vmatpush.xpose.msk.msra.mxu1 %vm371_vm5, %v370_v38 }
 0x221   : > { %957 = vmatmul.msk.f32.vlgmr.msra.gmra.mxu1 %vm371_vm5, %v1265_v36 }
 0x222   : > { %962 = vmatpush.xpose.msk.msrb.mxu1 %vm371_vm5, %v536_v39 }
 0x225   : > { %v451_v40 = vpop.permute.xlu1 %450 }
 0x226   : > { %959 = vmatpush.xpose.msk.msra.mxu3 %vm371_vm5, %v451_v40 }
 0x229   : > { %960 = vmatmul.msk.f32.vlgmr.msra.gmra.mxu3 %vm371_vm5, %v449_v37  ;;  %963 = vmatmul.msk.f32.vlgmr.msrb.gmra.mxu1 %vm371_vm5, %v534_v41 }
 0x22d   : > { %v621_v42 = vpop.permute.xlu1 %620 }
 0x22e   : > { %965 = vmatpush.xpose.msk.msra.mxu1 %vm371_vm5, %v621_v42 }
 0x231   : > { %966 = vmatmul.msk.f32.vlgmr.msra.gmra.mxu1 %vm371_vm5, %v619_v43 }
 0x29e   : > { %v393_v44 = vpop.f32.mrf.mxu1 }
 0x29f   : > { %v396_v45 = vmul.f32 0.35355338, %v393_v44 }
 0x2a1   : > { %v397_v46 = vsel %vm371_vm5, %v396_v45, -inf }
 0x2a2   : > { %398 = vmax.xlane.f32.xlu1 %v397_v46 }
 0x2a6   : > { %v558_v47 = vpop.f32.mrf.mxu1 }
 0x2a7   : > { %v561_v48 = vmul.f32 0.35355338, %v558_v47 }
 0x2a9   : > { %v562_v49 = vsel %vm371_vm5, %v561_v48, -inf }
 0x2aa   : > { %563 = vmax.xlane.f32.xlu0 %v562_v49 }
 0x2ac   : > { %v473_v50 = vpop.f32.mrf.mxu3 }
 0x2ad   : > { %v476_v51 = vmul.f32 0.35355338, %v473_v50 }
 0x2ae   : > { %v643_v53 = vpop.f32.mrf.mxu1 }
 0x2af   : > { %v477_v52 = vsel %vm371_vm5, %v476_v51, -inf  ;;  %v646_v54 = vmul.f32 0.35355338, %v643_v53 }
 0x2b0   : > { %478 = vmax.xlane.f32.xlu2 %v477_v52 }
 0x2b1   : > { %v647_v55 = vsel %vm371_vm5, %v646_v54, -inf }
 0x2b8   : > { %648 = vmax.xlane.f32.xlu2 %v647_v55 }
 0x2d0   : > { %421 = vrot.lane.b32.xlu2 %v1265_v36, %s1127_s12  ;;  %s889_s12 = sshll.u32 %s885_s25, 4  ;;  %s890_s12 = int_to_ptr.hbm [resolvable:$true] %s889_s12 }
 0x2d1   : > { %s1069_s9 = sshra.s32 %s890_s12, 4  ;;  %s1070_s9 = int_to_ptr.hbm [resolvable:$true] %s1069_s9 }
 0x2d2   : > { %p1076_p0 = scmp.lt.s32.totalorder %s1070_s9, %s1450_s8 }
 0x315   : > { %v399_v56 = vpop.xlane.xlu1 %398 }
 0x316   : > { %v400_v57 = vsub.f32 %v396_v45, %v399_v56 }
 0x318   : > { %v401_v58 = vmul.f32 1.442695, %v400_v57 }
 0x31a   : > { %1035 = vpow2.f32 %v401_v58 }
 0x31d   : > { %v564_v59 = vpop.xlane.xlu0 %563 }
 0x31e   : > { %v565_v60 = vsub.f32 %v561_v48, %v564_v59 }
 0x320   : > { %v1036_v61 = vpop.eup %1035  ;;  %v566_v62 = vmul.f32 1.442695, %v565_v60 }
 0x321   : > { %v403_v63 = vsel %vm371_vm5, %v1036_v61, 0.0 }
 0x322   : > { %1037 = vpow2.f32 %v566_v62  ;;  %404 = vadd.xlane.f32.xlu1 %v403_v63 }
 0x323   : > { %v479_v1 = vpop.xlane.xlu2 %478 }
 0x324   : > { %v480_v2 = vsub.f32 %v476_v51, %v479_v1 }
 0x326   : > { %v481_v3 = vmul.f32 1.442695, %v480_v2 }
 0x328   : > { %v1289_v4 = vpop.eup %1037  ;;  %1039 = vpow2.f32 %v481_v3 }
 0x329   : > { %v568_v5 = vsel %vm371_vm5, %v1289_v4, 0.0 }
 0x32a   : > { %569 = vadd.xlane.f32.xlu1 %v568_v5 }
 0x32b   : > { %v649_v6 = vpop.xlane.xlu2 %648 }
 0x32c   : > { %v650_v7 = vsub.f32 %v646_v54, %v649_v6 }
 0x32e   : > { %v1293_v9 = vpop.eup %1039  ;;  %v651_v10 = vmul.f32 1.442695, %v650_v7 }
 0x32f   : > { %v483_v11 = vsel %vm371_vm5, %v1293_v9, 0.0 }
 0x330   : > { %1041 = vpow2.f32 %v651_v10  ;;  %484 = vadd.xlane.f32.xlu2 %v483_v11  ;;  %v706_v11 = vld [vmem:[%s1447_s5 + $0x10] sm:$0xff] }
 0x333   : > { %v422_v12 = vpop.permute.xlu2 %421 }
 0x334   : > { %442 = vmatpush.msrb.mxu2 %v422_v12  ;;  %v705_v12 = vld [vmem:[%s1447_s5 + $0x8] sm:$0xff] }
 0x336   : > { %v1297_v13 = vpop.eup %1041 }
 0x337   : > { %v653_v14 = vsel %vm371_vm5, %v1297_v13, 0.0 }
 0x338   : > { %654 = vadd.xlane.f32.xlu0 %v653_v14 }
 0x343   : > { %501 = vrot.lane.b32.xlu1 %v1265_v36, %s1128_s13 }
 0x348   : > { %671 = vrot.lane.b32.xlu2 %v1265_v36, %s1129_s17  ;;  %s1071_s17 = scalar_lea.hbm %s1070_s9, 8 }
 0x349   : > { %p1072_p11 = scmp.ne.s32.totalorder %s1070_s9, %s1071_s17 }
 0x34b   : > { %p1073_p12 = pnand %p1072_p11, %p1217_p5 }
 0x34c   : > { %586 = vrot.lane.b32.xlu0 %v1265_v36, %s1130_s18 }
 0x34d   : > { %p1074_p13 = pneg %p1073_p12 }
 0x395   : > { %v405_v15 = vpop.xlane.xlu1 %404 }
 0x396   : > { %1043 = vrcp.f32 %v405_v15  ;;  %v417_v20 = vand.u32 2147483648, %v405_v15  ;;  %v415_v22 = vand.u32 2147483647, %v405_v15  ;;  %vm411_vm7 = vweird.f32 %v405_v15 }
 0x398   : > { %v418_v25 = vor.u32 1.1754944e-38, %v417_v20  ;;  %vm416_vm9 = vcmp.eq.f32.partialorder %v415_v22, 8.507059e+37 }
 0x39c   : > { %v1044_v16 = vpop.eup %1043 }
 0x39d   : > { %v407_v17 = vmul.f32 %v1044_v16, %v405_v15  ;;  %v570_v18 = vpop.xlane.xlu1 %569  ;;  %vm412_vm6 = vweird.f32 %v1044_v16 }
 0x39e   : > { %1045 = vrcp.f32 %v570_v18  ;;  %vm413_vm8 = vmor %vm411_vm7, %vm412_vm6  ;;  %v582_v48 = vand.u32 2147483648, %v570_v18  ;;  %vm576_vm15 = vweird.f32 %v570_v18  ;;  %v580_v52 = vand.u32 2147483647, %v570_v18 }
 0x39f   : > { %v408_v19 = vsub.f32 1.0, %v407_v17 }
 0x3a0   : > { %v583_v59 = vor.u32 1.1754944e-38, %v582_v48  ;;  %vm581_vm4 = vcmp.eq.f32.partialorder %v580_v52, 8.507059e+37  ;;  %v847_v48 = vld [vmem:[%s1449_s7 + $0x68] sm:$0xff]  ;;  %v844_v52 = vld [vmem:[%s1449_s7 + $0x50] sm:$0xff] }
 0x3a1   : > { %v409_v21 = vmul.f32 %v1044_v16, %v408_v19 }
 0x3a3   : > { %v410_v23 = vadd.f32 %v1044_v16, %v409_v21  ;;  %v485_v24 = vpop.xlane.xlu2 %484 }
 0x3a4   : > { %1047 = vrcp.f32 %v485_v24  ;;  %v1046_v27 = vpop.eup %1045  ;;  %v497_v37 = vand.u32 2147483648, %v485_v24  ;;  %v495_v39 = vand.u32 2147483647, %v485_v24  ;;  %vm491_vm11 = vweird.f32 %v485_v24 }
 0x3a5   : > { %v414_v28 = vsel %vm413_vm8, %v1044_v16, %v410_v23  ;;  %v572_v31 = vmul.f32 %v1046_v27, %v570_v18  ;;  %vm577_vm14 = vweird.f32 %v1046_v27  ;;  %vm616_vm8 = vcmask 195712  }
 0x3a6   : > { %v419_v29 = vsel %vm416_vm9, %v418_v25, %v414_v28  ;;  %v498_v43 = vor.u32 1.1754944e-38, %v497_v37  ;;  %vm496_vm13 = vcmp.eq.f32.partialorder %v495_v39, 8.507059e+37  ;;  %vm1306_vm1 = vmor %vm576_vm15, %vm577_vm14  ;;  %vm701_vm9 = vcmask 261312  }
 0x3a7   : > { %v420_v30 = vmul.f32 %v1036_v61, %v419_v29  ;;  %v573_v35 = vsub.f32 1.0, %v572_v31  ;;  %v708_v18 = vperm.slane %v1257_v26, 2  ;;  %v762_v29 = vld [vmem:[%s1448_s6 + $0x18] sm:$0xff]  ;;  %v759_v31 = vld [vmem:[%s1448_s6] sm:$0xff] }
 0x3a9   : > { %958 = vmatmul.msk.f32.vlgmr.msrb.gmra.mxu2 %vm371_vm5, %v420_v30  ;;  %v574_v40 = vmul.f32 %v1046_v27, %v573_v35  ;;  %v760_v30 = vld [vmem:[%s1448_s6 + $0x8] sm:$0xff] }
 0x3aa   : > { %v1048_v32 = vpop.eup %1047 }
 0x3ab   : > { %v487_v33 = vmul.f32 %v1048_v32, %v485_v24  ;;  %v655_v34 = vpop.xlane.xlu0 %654  ;;  %vm492_vm10 = vweird.f32 %v1048_v32  ;;  %v575_v46 = vadd.f32 %v1046_v27, %v574_v40  ;;  %v672_v57 = vpop.permute.xlu2 %671 }
 0x3ac   : > { %1049 = vrcp.f32 %v655_v34  ;;  %vm493_vm12 = vmor %vm491_vm11, %vm492_vm10  ;;  %v667_v53 = vand.u32 2147483648, %v655_v34  ;;  %v665_v56 = vand.u32 2147483647, %v655_v34  ;;  %vm661_vm3 = vweird.f32 %v655_v34 }
 0x3ad   : > { %v488_v36 = vsub.f32 1.0, %v487_v33  ;;  %v579_v58 = vsel %vm1306_vm1, %v1046_v27, %v575_v46 }
 0x3ae   : > { %v668_v61 = vor.u32 1.1754944e-38, %v667_v53  ;;  %vm666_vm7 = vcmp.eq.f32.partialorder %v665_v56, 8.507059e+37  ;;  %v584_v63 = vsel %vm581_vm4, %v583_v59, %v579_v58  ;;  %v841_v59 = vld [vmem:[%s1449_s7 + $0x38] sm:$0xff] }
 0x3af   : > { %v489_v38 = vmul.f32 %v1048_v32, %v488_v36  ;;  %v585_v5 = vmul.f32 %v1289_v4, %v584_v63  ;;  %v707_v4 = vld [vmem:[%s1447_s5 + $0x18] sm:$0xff]  ;;  %v839_v63 = vld [vmem:[%s1449_s7 + $0x28] sm:$0xff] }
 0x3b0   : > { %724 = vmatpush.msrb.mxu1 %v707_v4 }
 0x3b1   : > { %v490_v41 = vadd.f32 %v1048_v32, %v489_v38 }
 0x3b2   : > { %v1050_v42 = vpop.eup %1049  ;;  %725 = vmatpush.msrb.mxu1 %v706_v11 }
 0x3b3   : > { %v494_v44 = vsel %vm493_vm12, %v1048_v32, %v490_v41  ;;  %v657_v45 = vmul.f32 %v1050_v42, %v655_v34  ;;  %vm662_vm2 = vweird.f32 %v1050_v42  ;;  %v755_v41 = vperm.slane %v1257_v26, 3 }
 0x3b4   : > { %v499_v47 = vsel %vm496_vm13, %v498_v43, %v494_v44  ;;  %vm663_vm6 = vmor %vm661_vm3, %vm662_vm2  ;;  %726 = vmatpush.msrb.mxu1 %v705_v12  ;;  %v757_v44 = vperm.slane %v1257_v26, 4  ;;  %v835_v12 = vld [vmem:[%s1449_s7 + $0x8] sm:$0xff] }
 0x3b5   : > { %v658_v49 = vsub.f32 1.0, %v657_v45  ;;  %v502_v50 = vpop.permute.xlu1 %501  ;;  %v500_v51 = vmul.f32 %v1293_v9, %v499_v47  ;;  %v848_v47 = vld [vmem:[%s1449_s7 + $0x70] sm:$0xff] }
 0x3b6   : > { %522 = vmatpush.msra.mxu2 %v502_v50  ;;  %v846_v50 = vld [vmem:[%s1449_s7 + $0x60] sm:$0xff] }
 0x3b7   : > { %v659_v55 = vmul.f32 %v1050_v42, %v658_v49  ;;  %961 = vmatmul.msk.f32.vlgmr.msra.gmra.mxu2 %vm371_vm5, %v500_v51  ;;  %v1030_v49 = vld [vmem:[%s1445_s3] ss:$0 sm:$0xff]  ;;  %v845_v51 = vld [vmem:[%s1449_s7 + $0x58] sm:$0xff] }
 0x3b8   : > { %692 = vmatpush.msrb.mxu2 %v672_v57  ;;  %v842_v57 = vld [vmem:[%s1449_s7 + $0x40] sm:$0xff] }
 0x3b9   : > { %v660_v60 = vadd.f32 %v1050_v42, %v659_v55  ;;  %v843_v55 = vld [vmem:[%s1449_s7 + $0x48] sm:$0xff] }
 0x3bb   : > { %v664_v62 = vsel %vm663_vm6, %v1050_v42, %v660_v60 }
 0x3bc   : > { %v669_v1 = vsel %vm666_vm7, %v668_v61, %v664_v62  ;;  %v840_v61 = vld [vmem:[%s1449_s7 + $0x30] sm:$0xff] }
 0x3bd   : > { %v670_v2 = vmul.f32 %v1297_v13, %v669_v1  ;;  %v704_v13 = vld [vmem:[%s1447_s5] sm:$0xff] }
 0x3be   : > { %v587_v3 = vpop.permute.xlu0 %586  ;;  %727 = vmatpush.msrb.mxu1 %v704_v13 }
 0x3bf   : > { %607 = vmatpush.msrb.mxu3 %v587_v3  ;;  %967 = vmatmul.msk.f32.vlgmr.msrb.gmra.mxu2 %vm371_vm5, %v670_v2  ;;  %v838_v3 = vld [vmem:[%s1449_s7 + $0x20] sm:$0xff] }
 0x3c0   : > { %964 = vmatmul.msk.f32.vlgmr.msrb.gmra.mxu3 %vm371_vm5, %v585_v5 }
 0x3c1   : > { %782 = vmatpush.msra.mxu3 %v762_v29 }
 0x42c   : > { %v444_v6 = vpop.f32.mrf.mxu2 }
 0x42d   : > { %447 = vst.msk [vmem:[#allocation2] sm:$0xff] %vm371_vm5, %v444_v6  ;;  %vm531_vm5 = vcmask 130112  }
 0x43a   : > { %v524_v7 = vpop.f32.mrf.mxu2 }
 0x43b   : > { %528 = vrot.lane.b32.xlu0 %v524_v7, %s1131_s19  ;;  %v837_v7 = vld [vmem:[%s1449_s7 + $0x18] sm:$0xff] }
 0x442   : > { %v694_v9 = vpop.f32.mrf.mxu2 }
 0x443   : > { %v609_v10 = vpop.f32.mrf.mxu3  ;;  %698 = vrot.lane.b32.xlu2 %v694_v9, %s1132_s20  ;;  %s294_s20 = sand.u32 1, %s1109_s28  }
 0x444   : > { %613 = vrot.lane.b32.xlu1 %v609_v10, %s1133_s21  ;;  %v836_v10 = vld [vmem:[%s1449_s7 + $0x10] sm:$0xff]  ;;  %s953_s21 = sshll.u32 %s294_s20, 3  ;;  %s875_s13 = scalar_lea.sflag [#allocation4], %s294_s20 }
 0x445   : > { %s296_s26 = scalar_lea.vmem [#allocation3], %s953_s21  ;;  %s1075_s21 = scalar_lea.hbm %s1450_s8, 16 }
 0x446   : > { %s887_s10 = sshll.u32 %s296_s26, 4  ;;  %p1077_p1 = scmp.lt.s32.totalorder %s1075_s21, %s1071_s17  ;;  %s888_s10 = int_to_ptr.vmem [resolvable:$true] %s887_s10 }
 0x448   : > { %p1078_p2 = por %p1077_p1, %p1076_p0 }
 0x44a   : > { %p1079_p3 = pnand %p1078_p2, %p1074_p13 }
 0x49d   : > { %v699_v16 = vpop.permute.xlu2 %698 }
 0x4ad   : > { %v529_v14 = vpop.permute.xlu0 %528 }
 0x4ae   : > { %532 = vst.msk [vmem:[#allocation2] sm:$0xff] %vm531_vm5, %v529_v14  ;;  %v834_v14 = vld [vmem:[%s1449_s7] sm:$0xff] }
 0x4b6   : > { %v614_v15 = vpop.permute.xlu1 %613 }
 0x4b7   : > { %617 = vst.msk [vmem:[#allocation2] sm:$0xff] %vm616_vm8, %v614_v15 }
 0x4b8   : > { %702 = vst.msk [vmem:[#allocation2] sm:$0xff] %vm701_vm9, %v699_v16 }
 0x4bf   : > { %v703_v17 = vld [vmem:[#allocation2] sm:$0xff] }
 0x4c0   : > { %968 = vmatmul.msk.f32.vlgmr.msrb.gmra.mxu1 %vm303_vm0, %v703_v17 }
 0x53d   : > { %v729_v19 = vpop.f32.mrf.mxu1 }
 0x53e   : > { %v730_v20 = vadd.f32 %v729_v19, %v708_v18 }
 0x540   : > { %v1333_v21 = vadd.f32 %v730_v20, %v1232_v0  ;;  %v761_v0 = vld [vmem:[%s1448_s6 + $0x10] sm:$0xff] }
 0x541   : > { %783 = vmatpush.msra.mxu3 %v761_v0 }
 0x542   : > { %v733_v22 = vsel %vm303_vm0, %v1333_v21, 0.0 }
 0x543   : > { %734 = vadd.xlane.f32.xlu0 %v733_v22  ;;  %784 = vmatpush.msra.mxu3 %v760_v30 }
 0x545   : > { %785 = vmatpush.msra.mxu3 %v759_v31 }
 0x5b6   : > { %v735_v23 = vpop.xlane.xlu0 %734 }
 0x5b7   : > { %v736_v24 = vmul.f32 %v735_v23, %v1236_v8 }
 0x5b9   : > { %v737_v25 = vsub.f32 %v1333_v21, %v736_v24 }
 0x5bb   : > { %v738_v27 = vmul.f32 %v737_v25, %v737_v25 }
 0x5bd   : > { %v739_v28 = vsel %vm303_vm0, %v738_v27, 0.0 }
 0x5be   : > { %740 = vadd.xlane.f32.xlu1 %v739_v28 }
 0x631   : > { %v741_v32 = vpop.xlane.xlu1 %740 }
 0x632   : > { %v742_v33 = vmul.f32 %v741_v32, %v1236_v8  ;;  %v849_v8 = vld [vmem:[%s1449_s7 + $0x78] sm:$0xff] }
 0x633   : > { %850 = vmatpush.msra.mxu0 %v849_v8 }
 0x634   : > { %v743_v34 = vadd.f32 1e-05, %v742_v33 }
 0x635   : > { %851 = vmatpush.msra.mxu0 %v848_v47 }
 0x636   : > { %1051 = vrsqrt.f32 %v743_v34  ;;  %vm750_vm11 = vweird.f32 %v743_v34 }
 0x637   : > { %852 = vmatpush.msra.mxu0 %v847_v48 }
 0x639   : > { %853 = vmatpush.msra.mxu0 %v846_v50 }
 0x63b   : > { %854 = vmatpush.msra.mxu0 %v845_v51 }
 0x63c   : > { %v1052_v35 = vpop.eup %1051 }
 0x63d   : > { %v745_v36 = vmul.f32 %v1052_v35, %v743_v34  ;;  %vm751_vm10 = vweird.f32 %v1052_v35  ;;  %855 = vmatpush.msra.mxu0 %v844_v52 }
 0x63e   : > { %vm752_vm12 = vmor %vm750_vm11, %vm751_vm10 }
 0x63f   : > { %v746_v37 = vmul.f32 %v1052_v35, %v745_v36  ;;  %856 = vmatpush.msra.mxu0 %v843_v55 }
 0x641   : > { %v747_v38 = vmul.f32 0.5, %v746_v37  ;;  %857 = vmatpush.msra.mxu0 %v842_v57 }
 0x643   : > { %v748_v39 = vsub.f32 1.5, %v747_v38  ;;  %858 = vmatpush.msra.mxu0 %v841_v59 }
 0x645   : > { %v749_v40 = vmul.f32 %v1052_v35, %v748_v39  ;;  %859 = vmatpush.msra.mxu0 %v840_v61 }
 0x647   : > { %v753_v42 = vsel %vm752_vm12, %v1052_v35, %v749_v40  ;;  %860 = vmatpush.msra.mxu0 %v839_v63 }
 0x648   : > { %v754_v43 = vmul.f32 %v753_v42, %v737_v25 }
 0x649   : > { %861 = vmatpush.msra.mxu0 %v838_v3 }
 0x64a   : > { %v756_v45 = vmul.f32 %v755_v41, %v754_v43  ;;  %v871_v43 = vperm.slane %v1257_v26, 5 }
 0x64b   : > { %862 = vmatpush.msra.mxu0 %v837_v7 }
 0x64c   : > { %v758_v46 = vadd.f32 %v757_v44, %v756_v45 }
 0x64d   : > { %863 = vmatpush.msra.mxu0 %v836_v10 }
 0x64e   : > { %969 = vmatmul.msk.f32.vlgmr.msra.gmra.mxu3 %vm303_vm0, %v758_v46 }
 0x64f   : > { %864 = vmatpush.msra.mxu0 %v835_v12 }
 0x651   : > { %865 = vmatpush.msra.mxu0 %v834_v14 }
 0x6d1   : > { %v787_v53 = vpop.f32.mrf.mxu3 }
 0x6d2   : > { %v788_v54 = vadd.f32 %v1030_v49, %v787_v53 }
 0x6d4   : > { %v791_v56 = vmul.f32 0.70710677, %v788_v54  ;;  %v790_v40 = vmul.f32 0.5, %v788_v54 }
 0x6d6   : > { %v792_v58 = vmul.f32 %v791_v56, %v791_v56 }
 0x6d8   : > { %v793_v60 = vmin.f32 %v792_v58, 16.0 }
 0x6da   : > { %v794_v62 = vmul.f32 2.1237322e-06, %v793_v60  ;;  %v805_v1 = vmul.f32 3.8918573e-05, %v793_v60 }
 0x6dc   : > { %v795_v2 = vadd.f32 0.00028619796, %v794_v62  ;;  %v806_v5 = vadd.f32 0.001143296, %v805_v1 }
 0x6de   : > { %v796_v6 = vmul.f32 %v795_v2, %v793_v60  ;;  %v807_v9 = vmul.f32 %v806_v5, %v793_v60 }
 0x6e0   : > { %v808_v4 = vadd.f32 0.014752088, %v807_v9  ;;  %v797_v11 = vadd.f32 0.0036580483, %v796_v6 }
 0x6e2   : > { %v809_v13 = vmul.f32 %v808_v4, %v793_v60  ;;  %v798_v16 = vmul.f32 %v797_v11, %v793_v60 }
 0x6e4   : > { %v810_v15 = vadd.f32 0.112945676, %v809_v13  ;;  %v799_v19 = vadd.f32 0.05243302, %v798_v16 }
 0x6e6   : > { %v811_v17 = vmul.f32 %v810_v15, %v793_v60  ;;  %v800_v23 = vmul.f32 %v799_v19, %v793_v60 }
 0x6e8   : > { %v812_v18 = vadd.f32 0.4994258, %v811_v17  ;;  %v801_v24 = vadd.f32 0.18741608, %v800_v23 }
 0x6ea   : > { %v813_v20 = vmul.f32 %v812_v18, %v793_v60  ;;  %v802_v27 = vmul.f32 %v801_v24, %v793_v60 }
 0x6ec   : > { %v814_v22 = vadd.f32 1.0, %v813_v20  ;;  %v803_v30 = vadd.f32 1.1283791, %v802_v27 }
 0x6ee   : > { %1053 = vrcp.f32 %v814_v22  ;;  %v826_v0 = vand.u32 2147483648, %v814_v22  ;;  %v824_v32 = vand.u32 2147483647, %v814_v22  ;;  %vm820_vm14 = vweird.f32 %v814_v22 }
 0x6ef   : > { %v804_v35 = vmul.f32 %v803_v30, %v791_v56 }
 0x6f0   : > { %v827_v34 = vor.u32 1.1754944e-38, %v826_v0  ;;  %vm825_vm1 = vcmp.eq.f32.partialorder %v824_v32, 8.507059e+37 }
 0x6f4   : > { %v1054_v25 = vpop.eup %1053 }
 0x6f5   : > { %v816_v28 = vmul.f32 %v1054_v25, %v814_v22  ;;  %vm821_vm13 = vweird.f32 %v1054_v25 }
 0x6f6   : > { %vm822_vm15 = vmor %vm820_vm14, %vm821_vm13 }
 0x6f7   : > { %v817_v29 = vsub.f32 1.0, %v816_v28 }
 0x6f9   : > { %v818_v31 = vmul.f32 %v1054_v25, %v817_v29 }
 0x6fb   : > { %v819_v33 = vadd.f32 %v1054_v25, %v818_v31 }
 0x6fd   : > { %v823_v36 = vsel %vm822_vm15, %v1054_v25, %v819_v33 }
 0x6fe   : > { %v828_v37 = vsel %vm825_vm1, %v827_v34, %v823_v36 }
 0x6ff   : > { %v829_v38 = vmul.f32 %v828_v37, %v804_v35 }
 0x701   : > { %v970_v39 = vclamps-f32 %v829_v38, 1.0 }
 0x703   : > { %v832_v41 = vadd.f32 1.0, %v970_v39 }
 0x705   : > { %v833_v42 = vmul.f32 %v832_v41, %v790_v40 }
 0x707   : > { %866 = vmatmul.f32.vlgmr.msra.gmra.mxu0 %v833_v42 }
 0x784   : > { %v867_v44 = vpop.f32.mrf.mxu0 }
 0x785   : > { %v870_v45 = vadd.f32 %v867_v44, %v1333_v21 }
 0x787   : > { %v872_v46 = vadd.f32 %v871_v43, %v870_v45 }
 0x789   : > { %873 = vst.msk [vmem:[%s296_s26] sm:$0xff] %vm303_vm0, %v872_v46 }
 0x78a   : > { %1082 = shalt.err (!%p1079_p3)
}
 0x78b   : > { %975 = dma.vmem_to_hbm [thread:$0]  (%p1217_p5), %s888_s10, 128, %s890_s12, %s875_s13  }
 0x78c PF: > { %p981_p4 = scmp.ge.s32.totalorder %s1117_s30, 2  ;;  %s901_s20 = sand.u32 1, %s1105_s27  }
 0x78d   : > { %s902_s24 = scalar_lea.sflag [#allocation4], %s901_s20 }
 0x78e   : > { %p978_p7 = pnand %p981_p4, %p1221_p6 }
 0x790   : > { %p979_p8 = pneg %p978_p7 }
 0x792   : > { %1100 = dma.done.wait (%p979_p8), %s902_s24, 128  }
 0x793   : > { %1102 = vsyncadd (%p979_p8), %s902_s24, 4294967168  ;;  %p18_p9 = scmp.ge.s32.totalorder %s1204_s11, 4   ;;  %s1455_s27 = smov %s1109_s28 }
 0x794   : > { %s1456_s28 = smov %s1113_s29  ;;  %s1457_s29 = smov %s1215_s14 }
 0x795   : > { %s1458_s30 = smov %s1204_s11  ;;  %20 = sbr.rel (!%p18_p9) target bundleno = 3 (0x3), region = 87 }
 0x79a   :  { %908 = vsyncpa [#allocation4], 1 }
 0x79b   :  { %910 = vsyncpa [#allocation4 + $0x1], 1 }

</bundles_post_ra>
